<compile_context>
chip_gen: v7x
topology: tpu7x:2x2x1
jax: 0.10.0
libtpu: 0.0.40
codegen_flags: <defaults>
</compile_context>

<pallas_src>
import functools

import jax
import jax.numpy as jnp
from jax.experimental import pallas as pl
from jax.experimental.pallas import tpu as pltpu

_EPS = 1e-5
ACT_DTYPE = jnp.bfloat16          # HBM storage dtype for activations / weights
# ~48 MiB scoped VMEM: safe on v5e/v6e (128 MiB physical) and leaves headroom on a v7x
# TensorCore (64 MiB physical).
_CPARAMS = pltpu.CompilerParams(
    dimension_semantics=("parallel",),        # batch grid axis -> both TCs on v7x
    vmem_limit_bytes=48 * 1024 * 1024,
)


# --------------------- CBN prologue (tiny XLA pre-pass, not a kernel) ---------------------
def _cbn_prologue(x, z, cp, key):
    """ConditionalBatchNorm1d folded to per-(batch, channel) scale/shift.

    xn = x + nw * N(0,1); batch-norm stats over (B, T) per channel (two-pass jnp.var,
    no E[x^2]-mu^2 cancellation); gamma/beta = z @ W + b.  The per-element
    normalize+affine (scale*xn + shift) is applied inside the fused conv kernels.
    Noise is exact-normal from jax.random (matches torch .normal_(); the in-kernel TPU
    PRNG has no interpret lowering and was the VALU hot spot).
    """
    noise = jax.random.normal(key, x.shape, jnp.float32)
    xn = x.astype(jnp.float32) + cp["nw"] * noise
    xn16 = xn.astype(ACT_DTYPE)                       # what the kernel will actually see
    xs = xn16.astype(jnp.float32)
    m = jnp.mean(xs, axis=(0, 1))                     # (C,)
    v = jnp.var(xs, axis=(0, 1))                      # biased, like BatchNorm training
    rstd = jax.lax.rsqrt(v + _EPS)
    gamma = z @ cp["wg"] + cp["bg"]                   # (B, C)
    beta = z @ cp["wb"] + cp["bb"]                    # (B, C)
    scale = gamma * rstd[None, :]
    shift = beta - scale * m[None, :]
    return xn16, scale[:, None, :], shift[:, None, :]  # (B,T,C) bf16, (B,1,C) f32 x2


# -------- K1: CBN1 + ReLU + ConvTranspose upsample (+ composed residual branch) ----------
def _cbn_upsample_kernel(xn_ref, sc_ref, sh_ref, xraw_ref,
                         wu_ref, bu_ref, wr_ref, br_ref,
                         u_ref, r_ref, *, s, p):
    # Per-batch-element block: xn_ref/xraw_ref (T, Cin) bf16; sc/sh (1, Cin) f32.
    T, _ = xn_ref.shape

    # CBN1 (stats + style already folded into scale/shift) + first_stack ReLU; bf16 for MXU.
    a = jnp.maximum(sc_ref[...] * xn_ref[...].astype(jnp.float32) + sh_ref[...], 0.0)
    a = a.astype(ACT_DTYPE)
    xraw = xraw_ref[...]                              # residual branch uses the raw input

    def tconv(v, w_ref_, b_ref_):
        # ConvTranspose1d(stride=s, kernel=2s, padding=p=s//2), output sliced to T*s.
        # Phase decomposition: out[q*s + r] = W_{r+p} x[q] + W_{r+p+s} x[q-1]   (r <  s-p)
        #                                   = W_{r+p} x[q] + W_{r+p-s} x[q+1]   (r >= s-p)
        # Each tap is its own (T,Cin)x(Cin,Cout) dot (no contraction-dim lane concat);
        # the q-1 / q+1 shift is a sublane shift of the small (T,Cout) dot output.
        cout = w_ref_.shape[-1]
        zrow = jnp.zeros((1, cout), jnp.float32)
        phases = []
        for r in range(s):
            k0 = r + p
            pa = jnp.dot(v, w_ref_[k0], preferred_element_type=jnp.float32)
            if r < s - p:
                pb = jnp.dot(v, w_ref_[k0 + s], preferred_element_type=jnp.float32)
                pb = jnp.concatenate([zrow, pb[:T - 1, :]], axis=0)     # uses x[q-1]
            else:
                pb = jnp.dot(v, w_ref_[k0 - s], preferred_element_type=jnp.float32)
                pb = jnp.concatenate([pb[1:, :], zrow], axis=0)         # uses x[q+1]
            phases.append(pa + pb + b_ref_[...])
        # Phases packed lane-dense along channels; (T, s*Cout) is row-major identical to
        # (T*s, Cout) -> the interleave is a metadata reshape in the wrapper.
        return phases[0] if s == 1 else jnp.concatenate(phases, axis=-1)

    u_ref[...] = tconv(a, wu_ref, bu_ref).astype(u_ref.dtype)
    r_ref[...] = tconv(xraw, wr_ref, br_ref).astype(r_ref.dtype)


def cbn_upsample(xn, scale, shift, x_raw, up_p, res_p, *, up):
    B, T, cin = xn.shape
    c_up = up_p["w"].shape[-1]
    c_res = res_p["w"].shape[-1]
    kernel = functools.partial(_cbn_upsample_kernel, s=up, p=up // 2)
    u, res = pl.pallas_call(
        kernel,
        grid=(B,),
        in_specs=[
            pl.BlockSpec((None, T, cin), lambda b: (b, 0, 0)),          # xn (noised input)
            pl.BlockSpec((None, 1, cin), lambda b: (b, 0, 0)),          # scale
            pl.BlockSpec((None, 1, cin), lambda b: (b, 0, 0)),          # shift
            pl.BlockSpec((None, T, cin), lambda b: (b, 0, 0)),          # raw input (residual)
            pl.BlockSpec((2 * up, cin, c_up), lambda b: (0, 0, 0)),     # main tconv weights
            pl.BlockSpec((1, c_up), lambda b: (0, 0)),
            pl.BlockSpec((2 * up, cin, c_res), lambda b: (0, 0, 0)),    # residual tconv (1x1 composed)
            pl.BlockSpec((1, c_res), lambda b: (0, 0)),
        ],
        out_specs=(
            pl.BlockSpec((None, T, up * c_up), lambda b: (b, 0, 0)),
            pl.BlockSpec((None, T, up * c_res), lambda b: (b, 0, 0)),
        ),
        out_shape=(
            jax.ShapeDtypeStruct((B, T, up * c_up), ACT_DTYPE),
            jax.ShapeDtypeStruct((B, T, up * c_res), ACT_DTYPE),
        ),
        compiler_params=_CPARAMS,
    )(xn, scale, shift, x_raw, up_p["w"], up_p["b"], res_p["w"], res_p["b"])
    # Metadata reshape: (B, T, up*C) -> (B, T*up, C) (phase interleave, no kernel stores).
    return u.reshape(B, T * up, c_up), res.reshape(B, T * up, c_res)


# ---------- K2..K5: [CBN affine + ReLU +] dilated Conv1d [+ residual add], fused ----------
def _conv_block_kernel(*refs, K, dilation, affine, relu, has_res):
    it = iter(refs)
    x_ref = next(it)                                   # (T, Cin) bf16
    if affine:
        sc_ref, sh_ref = next(it), next(it)            # (1, Cin) f32 each
    w_ref, b_ref = next(it), next(it)                  # (K, Cin, Cout) bf16, (1, Cout) f32
    res_ref = next(it) if has_res else None            # (T, Cout) bf16
    out_ref = next(it)                                 # (T, Cout) bf16

    T, _ = x_ref.shape
    cout = out_ref.shape[-1]

    x = x_ref[...]
    if affine:
        a = sc_ref[...] * x.astype(jnp.float32) + sh_ref[...]   # CBN normalize+affine
        if relu:
            a = jnp.maximum(a, 0.0)
        a = a.astype(ACT_DTYPE)                        # bf16 operand for the MXU
    else:
        a = x

    # Dilated 'same' Conv1d as K per-tap dots accumulated in f32.  No K*Cin lane-concat
    # slab and no padded copy of the activation: the boundary handling is a sublane-axis
    # zero-row concat on the small (T, Cout) per-tap outputs.
    pad = (K - 1) // 2
    y = jnp.zeros((T, cout), jnp.float32)
    for k in range(K):
        pk = jnp.dot(a, w_ref[k], preferred_element_type=jnp.float32)
        off = (k - pad) * dilation                     # out[t] += W_k x[t + off]
        if off == 0:
            y = y + pk
        elif off > 0:
            zrow = jnp.zeros((off, cout), jnp.float32)
            y = y + jnp.concatenate([pk[off:, :], zrow], axis=0)
        else:
            zrow = jnp.zeros((-off, cout), jnp.float32)
            y = y + jnp.concatenate([zrow, pk[:T + off, :]], axis=0)
    y = y + b_ref[...]
    if has_res:
        y = y + res_ref[...].astype(jnp.float32)       # fused residual add
    out_ref[...] = y.astype(out_ref.dtype)


def conv_block(x, conv_p, *, kernel_size, dilation, affine=None, relu=False, residual=None):
    B, T, cin = x.shape
    cout = conv_p["w"].shape[-1]
    args = [x]
    specs = [pl.BlockSpec((None, T, cin), lambda b: (b, 0, 0))]
    if affine is not None:
        scale, shift = affine
        args += [scale, shift]
        specs += [pl.BlockSpec((None, 1, cin), lambda b: (b, 0, 0)),
                  pl.BlockSpec((None, 1, cin), lambda b: (b, 0, 0))]
    args += [conv_p["w"], conv_p["b"]]
    specs += [pl.BlockSpec((kernel_size, cin, cout), lambda b: (0, 0, 0)),
              pl.BlockSpec((1, cout), lambda b: (0, 0))]
    if residual is not None:
        args.append(residual)
        specs.append(pl.BlockSpec((None, T, cout), lambda b: (b, 0, 0)))
    kernel = functools.partial(_conv_block_kernel, K=kernel_size, dilation=dilation,
                               affine=affine is not None, relu=relu,
                               has_res=residual is not None)
    return pl.pallas_call(
        kernel,
        grid=(B,),
        in_specs=specs,
        out_specs=pl.BlockSpec((None, T, cout), lambda b: (b, 0, 0)),
        out_shape=jax.ShapeDtypeStruct((B, T, cout), ACT_DTYPE),
        compiler_params=_CPARAMS,
    )(*args)


# ----------------------------- parameter init (deterministic) -----------------------------
def _spectral_normalize(w, dim=0, iters=30):
    wm = jnp.moveaxis(w, dim, 0)
    wm = wm.reshape(wm.shape[0], -1)
    v = jnp.ones((wm.shape[1],), jnp.float32)
    u = jnp.ones((wm.shape[0],), jnp.float32)
    for _ in range(iters):
        u = wm @ v
        u = u / (jnp.linalg.norm(u) + 1e-12)
        v = wm.T @ u
        v = v / (jnp.linalg.norm(v) + 1e-12)
    sigma = u @ (wm @ v)
    return w / sigma


def init_params(key, c_in, c_hidden, z_ch, up):
    keys = iter(jax.random.split(key, 32))
    f32 = jnp.float32

    def nrm(shape, mean=0.0, std=0.02):
        return mean + std * jax.random.normal(next(keys), shape, f32)

    def cbn_p(C):
        # nn.Linear(z_ch, 2C): weight ~ N(1, 0.02), bias = 0, spectral_norm(dim=0).
        # Split into gamma / beta weights; consumed by the XLA prologue, kept in f32.
        w = _spectral_normalize(nrm((2 * C, z_ch), mean=1.0, std=0.02), dim=0)
        wt = w.T                                                   # (Z, 2C)
        return {"wg": wt[:, :C], "wb": wt[:, C:],
                "bg": jnp.zeros((C,), f32), "bb": jnp.zeros((C,), f32),
                "nw": jnp.zeros((), f32)}                          # NoiseInjection weight = 0

    def upsample_w(cin, cout):
        # torch ConvTranspose1d weight (Cin, Cout, 2*up); spectral_norm dim=1.
        w = _spectral_normalize(nrm((cin, cout, 2 * up), std=0.1), dim=1)
        return jnp.transpose(w, (2, 0, 1)), nrm((1, cout), std=0.05)   # (2s,cin,cout), bias

    def conv_w(cin, cout, k):
        # torch Conv1d weight (Cout, Cin, K); spectral_norm dim=0.
        w = _spectral_normalize(nrm((cout, cin, k), std=0.1), dim=0)
        return jnp.transpose(w, (2, 1, 0)), nrm((1, cout), std=0.05)   # (k,cin,cout), bias

    def pack(wt, bias):
        return {"w": wt.astype(ACT_DTYPE), "b": bias}

    # first_stack UpsampleNet
    wu, bu = upsample_w(c_in, c_in)
    # residual branch: UpsampleNet(c_in->c_in) then Conv1d(k=1, c_in->c_hidden); the 1x1
    # conv is composed into the transpose-conv taps (no extra kernel pass).
    wr, br_ = upsample_w(c_in, c_in)
    wc1, bc1 = conv_w(c_in, c_hidden, 1)
    wc = wc1[0]                                                    # (c_in, c_hidden)
    wrc = jnp.einsum("kio,oh->kih", wr, wc)
    brc = br_ @ wc + bc1

    return {"cbn1": cbn_p(c_in), "cbn2": cbn_p(c_hidden),
            "cbn3": cbn_p(c_hidden), "cbn4": cbn_p(c_hidden),
            "up1": pack(wu, bu), "res1": pack(wrc, brc),
            "conv1": pack(*conv_w(c_in, c_hidden, 3)),
            "conv2": pack(*conv_w(c_hidden, c_hidden, 3)),
            "conv3": pack(*conv_w(c_hidden, c_hidden, 3)),
            "conv4": pack(*conv_w(c_hidden, c_hidden, 3))}


# ------------------------------------- GBlock forward --------------------------------------
def gblock_forward(params, condition, z, noise_key, upsample_factor):
    # condition: (B, Cin, T) PyTorch NCW ; z: (B, z_channels)
    p = params
    x = jnp.transpose(condition, (0, 2, 1)).astype(ACT_DTYPE)      # -> (B, T, Cin)
    zf = z.astype(jnp.float32)
    k1, k2, k3, k4 = jax.random.split(noise_key, 4)

    # K1: CBN1 + ReLU + UpsampleNet (main path) and UpsampleNet->Conv1x1 (residual branch)
    xn1, sc1, sh1 = _cbn_prologue(x, zf, p["cbn1"], k1)
    u, res = cbn_upsample(xn1, sc1, sh1, x, p["up1"], p["res1"], up=upsample_factor)
    # K2: Conv1d(k=3) of first_stack on the upsampled main path
    o = conv_block(u, p["conv1"], kernel_size=3, dilation=1)
    # K3: CBN2 + ReLU + Conv1d(k=3, d=2) + residual1(inputs) add (fused)
    xn2, sc2, sh2 = _cbn_prologue(o, zf, p["cbn2"], k2)
    r = conv_block(xn2, p["conv2"], kernel_size=3, dilation=2,
                   affine=(sc2, sh2), relu=True, residual=res)
    # K4: CBN3 + ReLU + Conv1d(k=3, d=4)
    xn3, sc3, sh3 = _cbn_prologue(r, zf, p["cbn3"], k3)
    o = conv_block(xn3, p["conv3"], kernel_size=3, dilation=4,
                   affine=(sc3, sh3), relu=True)
    # K5: CBN4 + ReLU + Conv1d(k=3, d=8) + residual add (fused)
    xn4, sc4, sh4 = _cbn_prologue(o, zf, p["cbn4"], k4)
    out = conv_block(xn4, p["conv4"], kernel_size=3, dilation=8,
                     affine=(sc4, sh4), relu=True, residual=r)

    return jnp.transpose(out.astype(jnp.float32), (0, 2, 1))       # -> (B, hidden, T*up)


if __name__ == "__main__":
    B, C_IN, HIDDEN, Z_CH, T, UP = 2, 8, 16, 32, 8, 2

    key = jax.random.PRNGKey(0)
    k_cond, k_z, k_params, k_noise = jax.random.split(key, 4)

    condition = jax.random.normal(k_cond, (B, C_IN, T), jnp.float32)   # NCW like PyTorch
    z = jax.random.normal(k_z, (B, Z_CH), jnp.float32)
    params = init_params(k_params, C_IN, HIDDEN, Z_CH, UP)

    gblock = jax.jit(gblock_forward, static_argnums=(4,))
    out = gblock(params, condition, z, k_noise, UP)
    out = jax.block_until_ready(out)

    assert out.shape == (B, HIDDEN, T * UP), out.shape
    assert jnp.all(jnp.isfinite(out))
    print("KERNEL_OK")
</pallas_src>

<mosaic_0001>
module attributes {stable_mosaic.version = 11 : i64} {
  func.func @_conv_block_kernel(%arg0: i32, %arg1: memref<1x16x8xbf16, #tpu.memory_space<vmem>>, %arg2: memref<3x8x16xbf16, #tpu.memory_space<vmem>>, %arg3: memref<1x16xf32, #tpu.memory_space<vmem>>, %arg4: memref<1x16x16xbf16, #tpu.memory_space<vmem>>) attributes {dimension_semantics = [#tpu.dimension_semantics<parallel>], iteration_bounds = array<i64: 2>, scalar_prefetch = 0 : i64, scratch_operands = 0 : i64, tpu.core_type = #tpu.core_type<tc>, window_params = [{transform_indices = @transform_0, window_bounds = array<i64: 1, 16, 8>}, {pipeline_mode = #tpu.pipeline_mode<synchronous>, transform_indices = @transform_1, window_bounds = array<i64: 3, 8, 16>}, {pipeline_mode = #tpu.pipeline_mode<synchronous>, transform_indices = @transform_2, window_bounds = array<i64: 1, 16>}, {transform_indices = @transform_3, window_bounds = array<i64: 1, 16, 16>}]} {
    %c0 = arith.constant 0 : index
    %c0_0 = arith.constant 0 : index
    %c0_1 = arith.constant 0 : index
    %0 = vector.load %arg1[%c0, %c0_0, %c0_1] : memref<1x16x8xbf16, #tpu.memory_space<vmem>>, vector<1x16x8xbf16>
    %1 = vector.shape_cast %0 : vector<1x16x8xbf16> to vector<16x8xbf16>
    %cst = arith.constant 0.000000e+00 : f32
    %2 = vector.broadcast %cst : f32 to vector<16x16xf32>
    %c0_2 = arith.constant 0 : index
    %c0_3 = arith.constant 0 : index
    %c0_4 = arith.constant 0 : index
    %3 = vector.load %arg2[%c0_2, %c0_3, %c0_4] : memref<3x8x16xbf16, #tpu.memory_space<vmem>>, vector<1x8x16xbf16>
    %4 = vector.shape_cast %3 : vector<1x8x16xbf16> to vector<8x16xbf16>
    %cst_5 = arith.constant dense<0.000000e+00> : vector<16x16xf32>
    %5 = tpu.matmul %1, %4, %cst_5 {dimension_numbers = #tpu.dot_dimension_numbers<[1], [0], [0], [1], [0, 0, 1, 1], [], []>} : vector<16x8xbf16>, vector<8x16xbf16>, vector<16x16xf32> -> vector<16x16xf32>
    %cst_6 = arith.constant 0.000000e+00 : f32
    %6 = vector.broadcast %cst_6 : f32 to vector<1x16xf32>
    %7 = vector.extract_strided_slice %5 {offsets = [0, 0], sizes = [15, 16], strides = [1, 1]} : vector<16x16xf32> to vector<15x16xf32>
    %8 = tpu.concatenate %6, %7 in 0 : vector<1x16xf32>, vector<15x16xf32> -> vector<16x16xf32>
    %9 = arith.addf %2, %8 : vector<16x16xf32>
    %c1 = arith.constant 1 : index
    %c0_7 = arith.constant 0 : index
    %c0_8 = arith.constant 0 : index
    %10 = vector.load %arg2[%c1, %c0_7, %c0_8] : memref<3x8x16xbf16, #tpu.memory_space<vmem>>, vector<1x8x16xbf16>
    %11 = vector.shape_cast %10 : vector<1x8x16xbf16> to vector<8x16xbf16>
    %cst_9 = arith.constant dense<0.000000e+00> : vector<16x16xf32>
    %12 = tpu.matmul %1, %11, %cst_9 {dimension_numbers = #tpu.dot_dimension_numbers<[1], [0], [0], [1], [0, 0, 1, 1], [], []>} : vector<16x8xbf16>, vector<8x16xbf16>, vector<16x16xf32> -> vector<16x16xf32>
    %13 = arith.addf %9, %12 : vector<16x16xf32>
    %c2 = arith.constant 2 : index
    %c0_10 = arith.constant 0 : index
    %c0_11 = arith.constant 0 : index
    %14 = vector.load %arg2[%c2, %c0_10, %c0_11] : memref<3x8x16xbf16, #tpu.memory_space<vmem>>, vector<1x8x16xbf16>
    %15 = vector.shape_cast %14 : vector<1x8x16xbf16> to vector<8x16xbf16>
    %cst_12 = arith.constant dense<0.000000e+00> : vector<16x16xf32>
    %16 = tpu.matmul %1, %15, %cst_12 {dimension_numbers = #tpu.dot_dimension_numbers<[1], [0], [0], [1], [0, 0, 1, 1], [], []>} : vector<16x8xbf16>, vector<8x16xbf16>, vector<16x16xf32> -> vector<16x16xf32>
    %cst_13 = arith.constant 0.000000e+00 : f32
    %17 = vector.broadcast %cst_13 : f32 to vector<1x16xf32>
    %18 = vector.extract_strided_slice %16 {offsets = [1, 0], sizes = [15, 16], strides = [1, 1]} : vector<16x16xf32> to vector<15x16xf32>
    %19 = tpu.concatenate %18, %17 in 0 : vector<15x16xf32>, vector<1x16xf32> -> vector<16x16xf32>
    %20 = arith.addf %13, %19 : vector<16x16xf32>
    %c0_14 = arith.constant 0 : index
    %c0_15 = arith.constant 0 : index
    %21 = vector.load %arg3[%c0_14, %c0_15] : memref<1x16xf32, #tpu.memory_space<vmem>>, vector<1x16xf32>
    %22 = vector.broadcast %21 : vector<1x16xf32> to vector<16x16xf32>
    %23 = arith.addf %20, %22 : vector<16x16xf32>
    %24 = arith.truncf %23 : vector<16x16xf32> to vector<16x16xbf16>
    %c0_16 = arith.constant 0 : index
    %c0_17 = arith.constant 0 : index
    %c0_18 = arith.constant 0 : index
    %25 = vector.load %arg4[%c0_16, %c0_17, %c0_18] : memref<1x16x16xbf16, #tpu.memory_space<vmem>>, vector<1x16x16xbf16>
    %26 = vector.shape_cast %25 : vector<1x16x16xbf16> to vector<16x16xbf16>
    %27 = vector.shape_cast %24 : vector<16x16xbf16> to vector<1x16x16xbf16>
    tpu.vector_store %arg4[%c0_16, %c0_17, %c0_18], %27 {strides = array<i32>} : memref<1x16x16xbf16, #tpu.memory_space<vmem>>, vector<1x16x16xbf16>,
    return
  }
  func.func @transform_0(%arg0: i32) -> (i32, i32, i32) {
    %c0_i32 = arith.constant 0 : i32
    %c0_i32_0 = arith.constant 0 : i32
    %c0_i32_1 = arith.constant 0 : i32
    return %arg0, %c0_i32, %c0_i32_0 : i32, i32, i32
  }
  func.func @transform_1(%arg0: i32) -> (i32, i32, i32) {
    %c0_i32 = arith.constant 0 : i32
    %c0_i32_0 = arith.constant 0 : i32
    %c0_i32_1 = arith.constant 0 : i32
    %c0_i32_2 = arith.constant 0 : i32
    return %c0_i32, %c0_i32_0, %c0_i32_1 : i32, i32, i32
  }
  func.func @transform_2(%arg0: i32) -> (i32, i32) {
    %c0_i32 = arith.constant 0 : i32
    %c0_i32_0 = arith.constant 0 : i32
    %c0_i32_1 = arith.constant 0 : i32
    return %c0_i32, %c0_i32_0 : i32, i32
  }
  func.func @transform_3(%arg0: i32) -> (i32, i32, i32) {
    %c0_i32 = arith.constant 0 : i32
    %c0_i32_0 = arith.constant 0 : i32
    %c0_i32_1 = arith.constant 0 : i32
    return %arg0, %c0_i32, %c0_i32_0 : i32, i32, i32
  }
}

module attributes {stable_mosaic.version = 11 : i64} {
  func.func @_cbn_upsample_kernel(%arg0: i32, %arg1: memref<1x8x8xbf16, #tpu.memory_space<vmem>>, %arg2: memref<1x1x8xf32, #tpu.memory_space<vmem>>, %arg3: memref<1x1x8xf32, #tpu.memory_space<vmem>>, %arg4: memref<1x8x8xbf16, #tpu.memory_space<vmem>>, %arg5: memref<4x8x8xbf16, #tpu.memory_space<vmem>>, %arg6: memref<1x8xf32, #tpu.memory_space<vmem>>, %arg7: memref<4x8x16xbf16, #tpu.memory_space<vmem>>, %arg8: memref<1x16xf32, #tpu.memory_space<vmem>>, %arg9: memref<1x8x16xbf16, #tpu.memory_space<vmem>>, %arg10: memref<1x8x32xbf16, #tpu.memory_space<vmem>>) attributes {dimension_semantics = [#tpu.dimension_semantics<parallel>], iteration_bounds = array<i64: 2>, scalar_prefetch = 0 : i64, scratch_operands = 0 : i64, tpu.core_type = #tpu.core_type<tc>, window_params = [{transform_indices = @transform_0, window_bounds = array<i64: 1, 8, 8>}, {transform_indices = @transform_1, window_bounds = array<i64: 1, 1, 8>}, {transform_indices = @transform_2, window_bounds = array<i64: 1, 1, 8>}, {transform_indices = @transform_3, window_bounds = array<i64: 1, 8, 8>}, {pipeline_mode = #tpu.pipeline_mode<synchronous>, transform_indices = @transform_4, window_bounds = array<i64: 4, 8, 8>}, {pipeline_mode = #tpu.pipeline_mode<synchronous>, transform_indices = @transform_5, window_bounds = array<i64: 1, 8>}, {pipeline_mode = #tpu.pipeline_mode<synchronous>, transform_indices = @transform_6, window_bounds = array<i64: 4, 8, 16>}, {pipeline_mode = #tpu.pipeline_mode<synchronous>, transform_indices = @transform_7, window_bounds = array<i64: 1, 16>}, {transform_indices = @transform_8, window_bounds = array<i64: 1, 8, 16>}, {transform_indices = @transform_9, window_bounds = array<i64: 1, 8, 32>}]} {
    %c0 = arith.constant 0 : index
    %c0_0 = arith.constant 0 : index
    %c0_1 = arith.constant 0 : index
    %0 = vector.load %arg2[%c0, %c0_0, %c0_1] : memref<1x1x8xf32, #tpu.memory_space<vmem>>, vector<1x1x8xf32>
    %1 = vector.shape_cast %0 : vector<1x1x8xf32> to vector<1x8xf32>
    %c0_2 = arith.constant 0 : index
    %c0_3 = arith.constant 0 : index
    %c0_4 = arith.constant 0 : index
    %2 = vector.load %arg1[%c0_2, %c0_3, %c0_4] : memref<1x8x8xbf16, #tpu.memory_space<vmem>>, vector<1x8x8xbf16>
    %3 = vector.shape_cast %2 : vector<1x8x8xbf16> to vector<8x8xbf16>
    %4 = arith.extf %3 : vector<8x8xbf16> to vector<8x8xf32>
    %5 = vector.broadcast %1 : vector<1x8xf32> to vector<8x8xf32>
    %6 = arith.mulf %5, %4 : vector<8x8xf32>
    %c0_5 = arith.constant 0 : index
    %c0_6 = arith.constant 0 : index
    %c0_7 = arith.constant 0 : index
    %7 = vector.load %arg3[%c0_5, %c0_6, %c0_7] : memref<1x1x8xf32, #tpu.memory_space<vmem>>, vector<1x1x8xf32>
    %8 = vector.shape_cast %7 : vector<1x1x8xf32> to vector<1x8xf32>
    %9 = vector.broadcast %8 : vector<1x8xf32> to vector<8x8xf32>
    %10 = arith.addf %6, %9 : vector<8x8xf32>
    %cst = arith.constant 0.000000e+00 : f32
    %11 = vector.broadcast %cst : f32 to vector<8x8xf32>
    %12 = arith.maximumf %10, %11 : vector<8x8xf32>
    %13 = arith.truncf %12 : vector<8x8xf32> to vector<8x8xbf16>
    %c0_8 = arith.constant 0 : index
    %c0_9 = arith.constant 0 : index
    %c0_10 = arith.constant 0 : index
    %14 = vector.load %arg4[%c0_8, %c0_9, %c0_10] : memref<1x8x8xbf16, #tpu.memory_space<vmem>>, vector<1x8x8xbf16>
    %15 = vector.shape_cast %14 : vector<1x8x8xbf16> to vector<8x8xbf16>
    %cst_11 = arith.constant 0.000000e+00 : f32
    %16 = vector.broadcast %cst_11 : f32 to vector<1x8xf32>
    %c1 = arith.constant 1 : index
    %c0_12 = arith.constant 0 : index
    %c0_13 = arith.constant 0 : index
    %17 = vector.load %arg5[%c1, %c0_12, %c0_13] : memref<4x8x8xbf16, #tpu.memory_space<vmem>>, vector<1x8x8xbf16>
    %18 = vector.shape_cast %17 : vector<1x8x8xbf16> to vector<8x8xbf16>
    %cst_14 = arith.constant dense<0.000000e+00> : vector<8x8xf32>
    %19 = tpu.matmul %13, %18, %cst_14 {dimension_numbers = #tpu.dot_dimension_numbers<[1], [0], [0], [1], [0, 0, 1, 1], [], []>} : vector<8x8xbf16>, vector<8x8xbf16>, vector<8x8xf32> -> vector<8x8xf32>
    %c3 = arith.constant 3 : index
    %c0_15 = arith.constant 0 : index
    %c0_16 = arith.constant 0 : index
    %20 = vector.load %arg5[%c3, %c0_15, %c0_16] : memref<4x8x8xbf16, #tpu.memory_space<vmem>>, vector<1x8x8xbf16>
    %21 = vector.shape_cast %20 : vector<1x8x8xbf16> to vector<8x8xbf16>
    %cst_17 = arith.constant dense<0.000000e+00> : vector<8x8xf32>
    %22 = tpu.matmul %13, %21, %cst_17 {dimension_numbers = #tpu.dot_dimension_numbers<[1], [0], [0], [1], [0, 0, 1, 1], [], []>} : vector<8x8xbf16>, vector<8x8xbf16>, vector<8x8xf32> -> vector<8x8xf32>
    %23 = vector.extract_strided_slice %22 {offsets = [0, 0], sizes = [7, 8], strides = [1, 1]} : vector<8x8xf32> to vector<7x8xf32>
    %24 = tpu.concatenate %16, %23 in 0 : vector<1x8xf32>, vector<7x8xf32> -> vector<8x8xf32>
    %25 = arith.addf %19, %24 : vector<8x8xf32>
    %c0_18 = arith.constant 0 : index
    %c0_19 = arith.constant 0 : index
    %26 = vector.load %arg6[%c0_18, %c0_19] : memref<1x8xf32, #tpu.memory_space<vmem>>, vector<1x8xf32>
    %27 = vector.broadcast %26 : vector<1x8xf32> to vector<8x8xf32>
    %28 = arith.addf %25, %27 : vector<8x8xf32>
    %c2 = arith.constant 2 : index
    %c0_20 = arith.constant 0 : index
    %c0_21 = arith.constant 0 : index
    %29 = vector.load %arg5[%c2, %c0_20, %c0_21] : memref<4x8x8xbf16, #tpu.memory_space<vmem>>, vector<1x8x8xbf16>
    %30 = vector.shape_cast %29 : vector<1x8x8xbf16> to vector<8x8xbf16>
    %cst_22 = arith.constant dense<0.000000e+00> : vector<8x8xf32>
    %31 = tpu.matmul %13, %30, %cst_22 {dimension_numbers = #tpu.dot_dimension_numbers<[1], [0], [0], [1], [0, 0, 1, 1], [], []>} : vector<8x8xbf16>, vector<8x8xbf16>, vector<8x8xf32> -> vector<8x8xf32>
    %c0_23 = arith.constant 0 : index
    %c0_24 = arith.constant 0 : index
    %c0_25 = arith.constant 0 : index
    %32 = vector.load %arg5[%c0_23, %c0_24, %c0_25] : memref<4x8x8xbf16, #tpu.memory_space<vmem>>, vector<1x8x8xbf16>
    %33 = vector.shape_cast %32 : vector<1x8x8xbf16> to vector<8x8xbf16>
    %cst_26 = arith.constant dense<0.000000e+00> : vector<8x8xf32>
    %34 = tpu.matmul %13, %33, %cst_26 {dimension_numbers = #tpu.dot_dimension_numbers<[1], [0], [0], [1], [0, 0, 1, 1], [], []>} : vector<8x8xbf16>, vector<8x8xbf16>, vector<8x8xf32> -> vector<8x8xf32>
    %35 = vector.extract_strided_slice %34 {offsets = [1, 0], sizes = [7, 8], strides = [1, 1]} : vector<8x8xf32> to vector<7x8xf32>
    %36 = tpu.concatenate %35, %16 in 0 : vector<7x8xf32>, vector<1x8xf32> -> vector<8x8xf32>
    %37 = arith.addf %31, %36 : vector<8x8xf32>
    %c0_27 = arith.constant 0 : index
    %c0_28 = arith.constant 0 : index
    %38 = vector.load %arg6[%c0_27, %c0_28] : memref<1x8xf32, #tpu.memory_space<vmem>>, vector<1x8xf32>
    %39 = vector.broadcast %38 : vector<1x8xf32> to vector<8x8xf32>
    %40 = arith.addf %37, %39 : vector<8x8xf32>
    %41 = tpu.concatenate %28, %40 in 1 : vector<8x8xf32>, vector<8x8xf32> -> vector<8x16xf32>
    %42 = arith.truncf %41 : vector<8x16xf32> to vector<8x16xbf16>
    %c0_29 = arith.constant 0 : index
    %c0_30 = arith.constant 0 : index
    %c0_31 = arith.constant 0 : index
    %43 = vector.load %arg9[%c0_29, %c0_30, %c0_31] : memref<1x8x16xbf16, #tpu.memory_space<vmem>>, vector<1x8x16xbf16>
    %44 = vector.shape_cast %43 : vector<1x8x16xbf16> to vector<8x16xbf16>
    %45 = vector.shape_cast %42 : vector<8x16xbf16> to vector<1x8x16xbf16>
    tpu.vector_store %arg9[%c0_29, %c0_30, %c0_31], %45 {strides = array<i32>} : memref<1x8x16xbf16, #tpu.memory_space<vmem>>, vector<1x8x16xbf16>,
    %cst_32 = arith.constant 0.000000e+00 : f32
    %46 = vector.broadcast %cst_32 : f32 to vector<1x16xf32>
    %c1_33 = arith.constant 1 : index
    %c0_34 = arith.constant 0 : index
    %c0_35 = arith.constant 0 : index
    %47 = vector.load %arg7[%c1_33, %c0_34, %c0_35] : memref<4x8x16xbf16, #tpu.memory_space<vmem>>, vector<1x8x16xbf16>
    %48 = vector.shape_cast %47 : vector<1x8x16xbf16> to vector<8x16xbf16>
    %cst_36 = arith.constant dense<0.000000e+00> : vector<8x16xf32>
    %49 = tpu.matmul %15, %48, %cst_36 {dimension_numbers = #tpu.dot_dimension_numbers<[1], [0], [0], [1], [0, 0, 1, 1], [], []>} : vector<8x8xbf16>, vector<8x16xbf16>, vector<8x16xf32> -> vector<8x16xf32>
    %c3_37 = arith.constant 3 : index
    %c0_38 = arith.constant 0 : index
    %c0_39 = arith.constant 0 : index
    %50 = vector.load %arg7[%c3_37, %c0_38, %c0_39] : memref<4x8x16xbf16, #tpu.memory_space<vmem>>, vector<1x8x16xbf16>
    %51 = vector.shape_cast %50 : vector<1x8x16xbf16> to vector<8x16xbf16>
    %cst_40 = arith.constant dense<0.000000e+00> : vector<8x16xf32>
    %52 = tpu.matmul %15, %51, %cst_40 {dimension_numbers = #tpu.dot_dimension_numbers<[1], [0], [0], [1], [0, 0, 1, 1], [], []>} : vector<8x8xbf16>, vector<8x16xbf16>, vector<8x16xf32> -> vector<8x16xf32>
    %53 = vector.extract_strided_slice %52 {offsets = [0, 0], sizes = [7, 16], strides = [1, 1]} : vector<8x16xf32> to vector<7x16xf32>
    %54 = tpu.concatenate %46, %53 in 0 : vector<1x16xf32>, vector<7x16xf32> -> vector<8x16xf32>
    %55 = arith.addf %49, %54 : vector<8x16xf32>
    %c0_41 = arith.constant 0 : index
    %c0_42 = arith.constant 0 : index
    %56 = vector.load %arg8[%c0_41, %c0_42] : memref<1x16xf32, #tpu.memory_space<vmem>>, vector<1x16xf32>
    %57 = vector.broadcast %56 : vector<1x16xf32> to vector<8x16xf32>
    %58 = arith.addf %55, %57 : vector<8x16xf32>
    %c2_43 = arith.constant 2 : index
    %c0_44 = arith.constant 0 : index
    %c0_45 = arith.constant 0 : index
    %59 = vector.load %arg7[%c2_43, %c0_44, %c0_45] : memref<4x8x16xbf16, #tpu.memory_space<vmem>>, vector<1x8x16xbf16>
    %60 = vector.shape_cast %59 : vector<1x8x16xbf16> to vector<8x16xbf16>
    %cst_46 = arith.constant dense<0.000000e+00> : vector<8x16xf32>
    %61 = tpu.matmul %15, %60, %cst_46 {dimension_numbers = #tpu.dot_dimension_numbers<[1], [0], [0], [1], [0, 0, 1, 1], [], []>} : vector<8x8xbf16>, vector<8x16xbf16>, vector<8x16xf32> -> vector<8x16xf32>
    %c0_47 = arith.constant 0 : index
    %c0_48 = arith.constant 0 : index
    %c0_49 = arith.constant 0 : index
    %62 = vector.load %arg7[%c0_47, %c0_48, %c0_49] : memref<4x8x16xbf16, #tpu.memory_space<vmem>>, vector<1x8x16xbf16>
    %63 = vector.shape_cast %62 : vector<1x8x16xbf16> to vector<8x16xbf16>
    %cst_50 = arith.constant dense<0.000000e+00> : vector<8x16xf32>
    %64 = tpu.matmul %15, %63, %cst_50 {dimension_numbers = #tpu.dot_dimension_numbers<[1], [0], [0], [1], [0, 0, 1, 1], [], []>} : vector<8x8xbf16>, vector<8x16xbf16>, vector<8x16xf32> -> vector<8x16xf32>
    %65 = vector.extract_strided_slice %64 {offsets = [1, 0], sizes = [7, 16], strides = [1, 1]} : vector<8x16xf32> to vector<7x16xf32>
    %66 = tpu.concatenate %65, %46 in 0 : vector<7x16xf32>, vector<1x16xf32> -> vector<8x16xf32>
    %67 = arith.addf %61, %66 : vector<8x16xf32>
    %c0_51 = arith.constant 0 : index
    %c0_52 = arith.constant 0 : index
    %68 = vector.load %arg8[%c0_51, %c0_52] : memref<1x16xf32, #tpu.memory_space<vmem>>, vector<1x16xf32>
    %69 = vector.broadcast %68 : vector<1x16xf32> to vector<8x16xf32>
    %70 = arith.addf %67, %69 : vector<8x16xf32>
    %71 = tpu.concatenate %58, %70 in 1 : vector<8x16xf32>, vector<8x16xf32> -> vector<8x32xf32>
    %72 = arith.truncf %71 : vector<8x32xf32> to vector<8x32xbf16>
    %c0_53 = arith.constant 0 : index
    %c0_54 = arith.constant 0 : index
    %c0_55 = arith.constant 0 : index
    %73 = vector.load %arg10[%c0_53, %c0_54, %c0_55] : memref<1x8x32xbf16, #tpu.memory_space<vmem>>, vector<1x8x32xbf16>
    %74 = vector.shape_cast %73 : vector<1x8x32xbf16> to vector<8x32xbf16>
    %75 = vector.shape_cast %72 : vector<8x32xbf16> to vector<1x8x32xbf16>
    tpu.vector_store %arg10[%c0_53, %c0_54, %c0_55], %75 {strides = array<i32>} : memref<1x8x32xbf16, #tpu.memory_space<vmem>>, vector<1x8x32xbf16>,
    return
  }
  func.func @transform_0(%arg0: i32) -> (i32, i32, i32) {
    %c0_i32 = arith.constant 0 : i32
    %c0_i32_0 = arith.constant 0 : i32
    %c0_i32_1 = arith.constant 0 : i32
    return %arg0, %c0_i32, %c0_i32_0 : i32, i32, i32
  }
  func.func @transform_1(%arg0: i32) -> (i32, i32, i32) {
    %c0_i32 = arith.constant 0 : i32
    %c0_i32_0 = arith.constant 0 : i32
    %c0_i32_1 = arith.constant 0 : i32
    return %arg0, %c0_i32, %c0_i32_0 : i32, i32, i32
  }
  func.func @transform_2(%arg0: i32) -> (i32, i32, i32) {
    %c0_i32 = arith.constant 0 : i32
    %c0_i32_0 = arith.constant 0 : i32
    %c0_i32_1 = arith.constant 0 : i32
    return %arg0, %c0_i32, %c0_i32_0 : i32, i32, i32
  }
  func.func @transform_3(%arg0: i32) -> (i32, i32, i32) {
    %c0_i32 = arith.constant 0 : i32
    %c0_i32_0 = arith.constant 0 : i32
    %c0_i32_1 = arith.constant 0 : i32
    return %arg0, %c0_i32, %c0_i32_0 : i32, i32, i32
  }
  func.func @transform_4(%arg0: i32) -> (i32, i32, i32) {
    %c0_i32 = arith.constant 0 : i32
    %c0_i32_0 = arith.constant 0 : i32
    %c0_i32_1 = arith.constant 0 : i32
    %c0_i32_2 = arith.constant 0 : i32
    return %c0_i32, %c0_i32_0, %c0_i32_1 : i32, i32, i32
  }
  func.func @transform_5(%arg0: i32) -> (i32, i32) {
    %c0_i32 = arith.constant 0 : i32
    %c0_i32_0 = arith.constant 0 : i32
    %c0_i32_1 = arith.constant 0 : i32
    return %c0_i32, %c0_i32_0 : i32, i32
  }
  func.func @transform_6(%arg0: i32) -> (i32, i32, i32) {
    %c0_i32 = arith.constant 0 : i32
    %c0_i32_0 = arith.constant 0 : i32
    %c0_i32_1 = arith.constant 0 : i32
    %c0_i32_2 = arith.constant 0 : i32
    return %c0_i32, %c0_i32_0, %c0_i32_1 : i32, i32, i32
  }
  func.func @transform_7(%arg0: i32) -> (i32, i32) {
    %c0_i32 = arith.constant 0 : i32
    %c0_i32_0 = arith.constant 0 : i32
    %c0_i32_1 = arith.constant 0 : i32
    return %c0_i32, %c0_i32_0 : i32, i32
  }
  func.func @transform_8(%arg0: i32) -> (i32, i32, i32) {
    %c0_i32 = arith.constant 0 : i32
    %c0_i32_0 = arith.constant 0 : i32
    %c0_i32_1 = arith.constant 0 : i32
    return %arg0, %c0_i32, %c0_i32_0 : i32, i32, i32
  }
  func.func @transform_9(%arg0: i32) -> (i32, i32, i32) {
    %c0_i32 = arith.constant 0 : i32
    %c0_i32_0 = arith.constant 0 : i32
    %c0_i32_1 = arith.constant 0 : i32
    return %arg0, %c0_i32, %c0_i32_0 : i32, i32, i32
  }
}

module attributes {stable_mosaic.version = 11 : i64} {
  func.func @_conv_block_kernel(%arg0: i32, %arg1: memref<1x16x16xbf16, #tpu.memory_space<vmem>>, %arg2: memref<1x1x16xf32, #tpu.memory_space<vmem>>, %arg3: memref<1x1x16xf32, #tpu.memory_space<vmem>>, %arg4: memref<3x16x16xbf16, #tpu.memory_space<vmem>>, %arg5: memref<1x16xf32, #tpu.memory_space<vmem>>, %arg6: memref<1x16x16xbf16, #tpu.memory_space<vmem>>, %arg7: memref<1x16x16xbf16, #tpu.memory_space<vmem>>) attributes {dimension_semantics = [#tpu.dimension_semantics<parallel>], iteration_bounds = array<i64: 2>, scalar_prefetch = 0 : i64, scratch_operands = 0 : i64, tpu.core_type = #tpu.core_type<tc>, window_params = [{transform_indices = @transform_0, window_bounds = array<i64: 1, 16, 16>}, {transform_indices = @transform_1, window_bounds = array<i64: 1, 1, 16>}, {transform_indices = @transform_2, window_bounds = array<i64: 1, 1, 16>}, {pipeline_mode = #tpu.pipeline_mode<synchronous>, transform_indices = @transform_3, window_bounds = array<i64: 3, 16, 16>}, {pipeline_mode = #tpu.pipeline_mode<synchronous>, transform_indices = @transform_4, window_bounds = array<i64: 1, 16>}, {transform_indices = @transform_5, window_bounds = array<i64: 1, 16, 16>}, {transform_indices = @transform_6, window_bounds = array<i64: 1, 16, 16>}]} {
    %c0 = arith.constant 0 : index
    %c0_0 = arith.constant 0 : index
    %c0_1 = arith.constant 0 : index
    %0 = vector.load %arg1[%c0, %c0_0, %c0_1] : memref<1x16x16xbf16, #tpu.memory_space<vmem>>, vector<1x16x16xbf16>
    %1 = vector.shape_cast %0 : vector<1x16x16xbf16> to vector<16x16xbf16>
    %c0_2 = arith.constant 0 : index
    %c0_3 = arith.constant 0 : index
    %c0_4 = arith.constant 0 : index
    %2 = vector.load %arg2[%c0_2, %c0_3, %c0_4] : memref<1x1x16xf32, #tpu.memory_space<vmem>>, vector<1x1x16xf32>
    %3 = vector.shape_cast %2 : vector<1x1x16xf32> to vector<1x16xf32>
    %4 = arith.extf %1 : vector<16x16xbf16> to vector<16x16xf32>
    %5 = vector.broadcast %3 : vector<1x16xf32> to vector<16x16xf32>
    %6 = arith.mulf %5, %4 : vector<16x16xf32>
    %c0_5 = arith.constant 0 : index
    %c0_6 = arith.constant 0 : index
    %c0_7 = arith.constant 0 : index
    %7 = vector.load %arg3[%c0_5, %c0_6, %c0_7] : memref<1x1x16xf32, #tpu.memory_space<vmem>>, vector<1x1x16xf32>
    %8 = vector.shape_cast %7 : vector<1x1x16xf32> to vector<1x16xf32>
    %9 = vector.broadcast %8 : vector<1x16xf32> to vector<16x16xf32>
    %10 = arith.addf %6, %9 : vector<16x16xf32>
    %cst = arith.constant 0.000000e+00 : f32
    %11 = vector.broadcast %cst : f32 to vector<16x16xf32>
    %12 = arith.maximumf %10, %11 : vector<16x16xf32>
    %13 = arith.truncf %12 : vector<16x16xf32> to vector<16x16xbf16>
    %cst_8 = arith.constant 0.000000e+00 : f32
    %14 = vector.broadcast %cst_8 : f32 to vector<16x16xf32>
    %c0_9 = arith.constant 0 : index
    %c0_10 = arith.constant 0 : index
    %c0_11 = arith.constant 0 : index
    %15 = vector.load %arg4[%c0_9, %c0_10, %c0_11] : memref<3x16x16xbf16, #tpu.memory_space<vmem>>, vector<1x16x16xbf16>
    %16 = vector.shape_cast %15 : vector<1x16x16xbf16> to vector<16x16xbf16>
    %cst_12 = arith.constant dense<0.000000e+00> : vector<16x16xf32>
    %17 = tpu.matmul %13, %16, %cst_12 {dimension_numbers = #tpu.dot_dimension_numbers<[1], [0], [0], [1], [0, 0, 1, 1], [], []>} : vector<16x16xbf16>, vector<16x16xbf16>, vector<16x16xf32> -> vector<16x16xf32>
    %cst_13 = arith.constant 0.000000e+00 : f32
    %18 = vector.broadcast %cst_13 : f32 to vector<2x16xf32>
    %19 = vector.extract_strided_slice %17 {offsets = [0, 0], sizes = [14, 16], strides = [1, 1]} : vector<16x16xf32> to vector<14x16xf32>
    %20 = tpu.concatenate %18, %19 in 0 : vector<2x16xf32>, vector<14x16xf32> -> vector<16x16xf32>
    %21 = arith.addf %14, %20 : vector<16x16xf32>
    %c1 = arith.constant 1 : index
    %c0_14 = arith.constant 0 : index
    %c0_15 = arith.constant 0 : index
    %22 = vector.load %arg4[%c1, %c0_14, %c0_15] : memref<3x16x16xbf16, #tpu.memory_space<vmem>>, vector<1x16x16xbf16>
    %23 = vector.shape_cast %22 : vector<1x16x16xbf16> to vector<16x16xbf16>
    %cst_16 = arith.constant dense<0.000000e+00> : vector<16x16xf32>
    %24 = tpu.matmul %13, %23, %cst_16 {dimension_numbers = #tpu.dot_dimension_numbers<[1], [0], [0], [1], [0, 0, 1, 1], [], []>} : vector<16x16xbf16>, vector<16x16xbf16>, vector<16x16xf32> -> vector<16x16xf32>
    %25 = arith.addf %21, %24 : vector<16x16xf32>
    %c2 = arith.constant 2 : index
    %c0_17 = arith.constant 0 : index
    %c0_18 = arith.constant 0 : index
    %26 = vector.load %arg4[%c2, %c0_17, %c0_18] : memref<3x16x16xbf16, #tpu.memory_space<vmem>>, vector<1x16x16xbf16>
    %27 = vector.shape_cast %26 : vector<1x16x16xbf16> to vector<16x16xbf16>
    %cst_19 = arith.constant dense<0.000000e+00> : vector<16x16xf32>
    %28 = tpu.matmul %13, %27, %cst_19 {dimension_numbers = #tpu.dot_dimension_numbers<[1], [0], [0], [1], [0, 0, 1, 1], [], []>} : vector<16x16xbf16>, vector<16x16xbf16>, vector<16x16xf32> -> vector<16x16xf32>
    %cst_20 = arith.constant 0.000000e+00 : f32
    %29 = vector.broadcast %cst_20 : f32 to vector<2x16xf32>
    %30 = vector.extract_strided_slice %28 {offsets = [2, 0], sizes = [14, 16], strides = [1, 1]} : vector<16x16xf32> to vector<14x16xf32>
    %31 = tpu.concatenate %30, %29 in 0 : vector<14x16xf32>, vector<2x16xf32> -> vector<16x16xf32>
    %32 = arith.addf %25, %31 : vector<16x16xf32>
    %c0_21 = arith.constant 0 : index
    %c0_22 = arith.constant 0 : index
    %33 = vector.load %arg5[%c0_21, %c0_22] : memref<1x16xf32, #tpu.memory_space<vmem>>, vector<1x16xf32>
    %34 = vector.broadcast %33 : vector<1x16xf32> to vector<16x16xf32>
    %35 = arith.addf %32, %34 : vector<16x16xf32>
    %c0_23 = arith.constant 0 : index
    %c0_24 = arith.constant 0 : index
    %c0_25 = arith.constant 0 : index
    %36 = vector.load %arg6[%c0_23, %c0_24, %c0_25] : memref<1x16x16xbf16, #tpu.memory_space<vmem>>, vector<1x16x16xbf16>
    %37 = vector.shape_cast %36 : vector<1x16x16xbf16> to vector<16x16xbf16>
    %38 = arith.extf %37 : vector<16x16xbf16> to vector<16x16xf32>
    %39 = arith.addf %35, %38 : vector<16x16xf32>
    %40 = arith.truncf %39 : vector<16x16xf32> to vector<16x16xbf16>
    %c0_26 = arith.constant 0 : index
    %c0_27 = arith.constant 0 : index
    %c0_28 = arith.constant 0 : index
    %41 = vector.load %arg7[%c0_26, %c0_27, %c0_28] : memref<1x16x16xbf16, #tpu.memory_space<vmem>>, vector<1x16x16xbf16>
    %42 = vector.shape_cast %41 : vector<1x16x16xbf16> to vector<16x16xbf16>
    %43 = vector.shape_cast %40 : vector<16x16xbf16> to vector<1x16x16xbf16>
    tpu.vector_store %arg7[%c0_26, %c0_27, %c0_28], %43 {strides = array<i32>} : memref<1x16x16xbf16, #tpu.memory_space<vmem>>, vector<1x16x16xbf16>,
    return
  }
  func.func @transform_0(%arg0: i32) -> (i32, i32, i32) {
    %c0_i32 = arith.constant 0 : i32
    %c0_i32_0 = arith.constant 0 : i32
    %c0_i32_1 = arith.constant 0 : i32
    return %arg0, %c0_i32, %c0_i32_0 : i32, i32, i32
  }
  func.func @transform_1(%arg0: i32) -> (i32, i32, i32) {
    %c0_i32 = arith.constant 0 : i32
    %c0_i32_0 = arith.constant 0 : i32
    %c0_i32_1 = arith.constant 0 : i32
    return %arg0, %c0_i32, %c0_i32_0 : i32, i32, i32
  }
  func.func @transform_2(%arg0: i32) -> (i32, i32, i32) {
    %c0_i32 = arith.constant 0 : i32
    %c0_i32_0 = arith.constant 0 : i32
    %c0_i32_1 = arith.constant 0 : i32
    return %arg0, %c0_i32, %c0_i32_0 : i32, i32, i32
  }
  func.func @transform_3(%arg0: i32) -> (i32, i32, i32) {
    %c0_i32 = arith.constant 0 : i32
    %c0_i32_0 = arith.constant 0 : i32
    %c0_i32_1 = arith.constant 0 : i32
    %c0_i32_2 = arith.constant 0 : i32
    return %c0_i32, %c0_i32_0, %c0_i32_1 : i32, i32, i32
  }
  func.func @transform_4(%arg0: i32) -> (i32, i32) {
    %c0_i32 = arith.constant 0 : i32
    %c0_i32_0 = arith.constant 0 : i32
    %c0_i32_1 = arith.constant 0 : i32
    return %c0_i32, %c0_i32_0 : i32, i32
  }
  func.func @transform_5(%arg0: i32) -> (i32, i32, i32) {
    %c0_i32 = arith.constant 0 : i32
    %c0_i32_0 = arith.constant 0 : i32
    %c0_i32_1 = arith.constant 0 : i32
    return %arg0, %c0_i32, %c0_i32_0 : i32, i32, i32
  }
  func.func @transform_6(%arg0: i32) -> (i32, i32, i32) {
    %c0_i32 = arith.constant 0 : i32
    %c0_i32_0 = arith.constant 0 : i32
    %c0_i32_1 = arith.constant 0 : i32
    return %arg0, %c0_i32, %c0_i32_0 : i32, i32, i32
  }
}

module attributes {stable_mosaic.version = 11 : i64} {
  func.func @_conv_block_kernel(%arg0: i32, %arg1: memref<1x16x16xbf16, #tpu.memory_space<vmem>>, %arg2: memref<1x1x16xf32, #tpu.memory_space<vmem>>, %arg3: memref<1x1x16xf32, #tpu.memory_space<vmem>>, %arg4: memref<3x16x16xbf16, #tpu.memory_space<vmem>>, %arg5: memref<1x16xf32, #tpu.memory_space<vmem>>, %arg6: memref<1x16x16xbf16, #tpu.memory_space<vmem>>) attributes {dimension_semantics = [#tpu.dimension_semantics<parallel>], iteration_bounds = array<i64: 2>, scalar_prefetch = 0 : i64, scratch_operands = 0 : i64, tpu.core_type = #tpu.core_type<tc>, window_params = [{transform_indices = @transform_0, window_bounds = array<i64: 1, 16, 16>}, {transform_indices = @transform_1, window_bounds = array<i64: 1, 1, 16>}, {transform_indices = @transform_2, window_bounds = array<i64: 1, 1, 16>}, {pipeline_mode = #tpu.pipeline_mode<synchronous>, transform_indices = @transform_3, window_bounds = array<i64: 3, 16, 16>}, {pipeline_mode = #tpu.pipeline_mode<synchronous>, transform_indices = @transform_4, window_bounds = array<i64: 1, 16>}, {transform_indices = @transform_5, window_bounds = array<i64: 1, 16, 16>}]} {
    %c0 = arith.constant 0 : index
    %c0_0 = arith.constant 0 : index
    %c0_1 = arith.constant 0 : index
    %0 = vector.load %arg1[%c0, %c0_0, %c0_1] : memref<1x16x16xbf16, #tpu.memory_space<vmem>>, vector<1x16x16xbf16>
    %1 = vector.shape_cast %0 : vector<1x16x16xbf16> to vector<16x16xbf16>
    %c0_2 = arith.constant 0 : index
    %c0_3 = arith.constant 0 : index
    %c0_4 = arith.constant 0 : index
    %2 = vector.load %arg2[%c0_2, %c0_3, %c0_4] : memref<1x1x16xf32, #tpu.memory_space<vmem>>, vector<1x1x16xf32>
    %3 = vector.shape_cast %2 : vector<1x1x16xf32> to vector<1x16xf32>
    %4 = arith.extf %1 : vector<16x16xbf16> to vector<16x16xf32>
    %5 = vector.broadcast %3 : vector<1x16xf32> to vector<16x16xf32>
    %6 = arith.mulf %5, %4 : vector<16x16xf32>
    %c0_5 = arith.constant 0 : index
    %c0_6 = arith.constant 0 : index
    %c0_7 = arith.constant 0 : index
    %7 = vector.load %arg3[%c0_5, %c0_6, %c0_7] : memref<1x1x16xf32, #tpu.memory_space<vmem>>, vector<1x1x16xf32>
    %8 = vector.shape_cast %7 : vector<1x1x16xf32> to vector<1x16xf32>
    %9 = vector.broadcast %8 : vector<1x16xf32> to vector<16x16xf32>
    %10 = arith.addf %6, %9 : vector<16x16xf32>
    %cst = arith.constant 0.000000e+00 : f32
    %11 = vector.broadcast %cst : f32 to vector<16x16xf32>
    %12 = arith.maximumf %10, %11 : vector<16x16xf32>
    %13 = arith.truncf %12 : vector<16x16xf32> to vector<16x16xbf16>
    %cst_8 = arith.constant 0.000000e+00 : f32
    %14 = vector.broadcast %cst_8 : f32 to vector<16x16xf32>
    %c0_9 = arith.constant 0 : index
    %c0_10 = arith.constant 0 : index
    %c0_11 = arith.constant 0 : index
    %15 = vector.load %arg4[%c0_9, %c0_10, %c0_11] : memref<3x16x16xbf16, #tpu.memory_space<vmem>>, vector<1x16x16xbf16>
    %16 = vector.shape_cast %15 : vector<1x16x16xbf16> to vector<16x16xbf16>
    %cst_12 = arith.constant dense<0.000000e+00> : vector<16x16xf32>
    %17 = tpu.matmul %13, %16, %cst_12 {dimension_numbers = #tpu.dot_dimension_numbers<[1], [0], [0], [1], [0, 0, 1, 1], [], []>} : vector<16x16xbf16>, vector<16x16xbf16>, vector<16x16xf32> -> vector<16x16xf32>
    %cst_13 = arith.constant 0.000000e+00 : f32
    %18 = vector.broadcast %cst_13 : f32 to vector<4x16xf32>
    %19 = vector.extract_strided_slice %17 {offsets = [0, 0], sizes = [12, 16], strides = [1, 1]} : vector<16x16xf32> to vector<12x16xf32>
    %20 = tpu.concatenate %18, %19 in 0 : vector<4x16xf32>, vector<12x16xf32> -> vector<16x16xf32>
    %21 = arith.addf %14, %20 : vector<16x16xf32>
    %c1 = arith.constant 1 : index
    %c0_14 = arith.constant 0 : index
    %c0_15 = arith.constant 0 : index
    %22 = vector.load %arg4[%c1, %c0_14, %c0_15] : memref<3x16x16xbf16, #tpu.memory_space<vmem>>, vector<1x16x16xbf16>
    %23 = vector.shape_cast %22 : vector<1x16x16xbf16> to vector<16x16xbf16>
    %cst_16 = arith.constant dense<0.000000e+00> : vector<16x16xf32>
    %24 = tpu.matmul %13, %23, %cst_16 {dimension_numbers = #tpu.dot_dimension_numbers<[1], [0], [0], [1], [0, 0, 1, 1], [], []>} : vector<16x16xbf16>, vector<16x16xbf16>, vector<16x16xf32> -> vector<16x16xf32>
    %25 = arith.addf %21, %24 : vector<16x16xf32>
    %c2 = arith.constant 2 : index
    %c0_17 = arith.constant 0 : index
    %c0_18 = arith.constant 0 : index
    %26 = vector.load %arg4[%c2, %c0_17, %c0_18] : memref<3x16x16xbf16, #tpu.memory_space<vmem>>, vector<1x16x16xbf16>
    %27 = vector.shape_cast %26 : vector<1x16x16xbf16> to vector<16x16xbf16>
    %cst_19 = arith.constant dense<0.000000e+00> : vector<16x16xf32>
    %28 = tpu.matmul %13, %27, %cst_19 {dimension_numbers = #tpu.dot_dimension_numbers<[1], [0], [0], [1], [0, 0, 1, 1], [], []>} : vector<16x16xbf16>, vector<16x16xbf16>, vector<16x16xf32> -> vector<16x16xf32>
    %cst_20 = arith.constant 0.000000e+00 : f32
    %29 = vector.broadcast %cst_20 : f32 to vector<4x16xf32>
    %30 = vector.extract_strided_slice %28 {offsets = [4, 0], sizes = [12, 16], strides = [1, 1]} : vector<16x16xf32> to vector<12x16xf32>
    %31 = tpu.concatenate %30, %29 in 0 : vector<12x16xf32>, vector<4x16xf32> -> vector<16x16xf32>
    %32 = arith.addf %25, %31 : vector<16x16xf32>
    %c0_21 = arith.constant 0 : index
    %c0_22 = arith.constant 0 : index
    %33 = vector.load %arg5[%c0_21, %c0_22] : memref<1x16xf32, #tpu.memory_space<vmem>>, vector<1x16xf32>
    %34 = vector.broadcast %33 : vector<1x16xf32> to vector<16x16xf32>
    %35 = arith.addf %32, %34 : vector<16x16xf32>
    %36 = arith.truncf %35 : vector<16x16xf32> to vector<16x16xbf16>
    %c0_23 = arith.constant 0 : index
    %c0_24 = arith.constant 0 : index
    %c0_25 = arith.constant 0 : index
    %37 = vector.load %arg6[%c0_23, %c0_24, %c0_25] : memref<1x16x16xbf16, #tpu.memory_space<vmem>>, vector<1x16x16xbf16>
    %38 = vector.shape_cast %37 : vector<1x16x16xbf16> to vector<16x16xbf16>
    %39 = vector.shape_cast %36 : vector<16x16xbf16> to vector<1x16x16xbf16>
    tpu.vector_store %arg6[%c0_23, %c0_24, %c0_25], %39 {strides = array<i32>} : memref<1x16x16xbf16, #tpu.memory_space<vmem>>, vector<1x16x16xbf16>,
    return
  }
  func.func @transform_0(%arg0: i32) -> (i32, i32, i32) {
    %c0_i32 = arith.constant 0 : i32
    %c0_i32_0 = arith.constant 0 : i32
    %c0_i32_1 = arith.constant 0 : i32
    return %arg0, %c0_i32, %c0_i32_0 : i32, i32, i32
  }
  func.func @transform_1(%arg0: i32) -> (i32, i32, i32) {
    %c0_i32 = arith.constant 0 : i32
    %c0_i32_0 = arith.constant 0 : i32
    %c0_i32_1 = arith.constant 0 : i32
    return %arg0, %c0_i32, %c0_i32_0 : i32, i32, i32
  }
  func.func @transform_2(%arg0: i32) -> (i32, i32, i32) {
    %c0_i32 = arith.constant 0 : i32
    %c0_i32_0 = arith.constant 0 : i32
    %c0_i32_1 = arith.constant 0 : i32
    return %arg0, %c0_i32, %c0_i32_0 : i32, i32, i32
  }
  func.func @transform_3(%arg0: i32) -> (i32, i32, i32) {
    %c0_i32 = arith.constant 0 : i32
    %c0_i32_0 = arith.constant 0 : i32
    %c0_i32_1 = arith.constant 0 : i32
    %c0_i32_2 = arith.constant 0 : i32
    return %c0_i32, %c0_i32_0, %c0_i32_1 : i32, i32, i32
  }
  func.func @transform_4(%arg0: i32) -> (i32, i32) {
    %c0_i32 = arith.constant 0 : i32
    %c0_i32_0 = arith.constant 0 : i32
    %c0_i32_1 = arith.constant 0 : i32
    return %c0_i32, %c0_i32_0 : i32, i32
  }
  func.func @transform_5(%arg0: i32) -> (i32, i32, i32) {
    %c0_i32 = arith.constant 0 : i32
    %c0_i32_0 = arith.constant 0 : i32
    %c0_i32_1 = arith.constant 0 : i32
    return %arg0, %c0_i32, %c0_i32_0 : i32, i32, i32
  }
}

module attributes {stable_mosaic.version = 11 : i64} {
  func.func @_conv_block_kernel(%arg0: i32, %arg1: memref<1x16x16xbf16, #tpu.memory_space<vmem>>, %arg2: memref<1x1x16xf32, #tpu.memory_space<vmem>>, %arg3: memref<1x1x16xf32, #tpu.memory_space<vmem>>, %arg4: memref<3x16x16xbf16, #tpu.memory_space<vmem>>, %arg5: memref<1x16xf32, #tpu.memory_space<vmem>>, %arg6: memref<1x16x16xbf16, #tpu.memory_space<vmem>>, %arg7: memref<1x16x16xbf16, #tpu.memory_space<vmem>>) attributes {dimension_semantics = [#tpu.dimension_semantics<parallel>], iteration_bounds = array<i64: 2>, scalar_prefetch = 0 : i64, scratch_operands = 0 : i64, tpu.core_type = #tpu.core_type<tc>, window_params = [{transform_indices = @transform_0, window_bounds = array<i64: 1, 16, 16>}, {transform_indices = @transform_1, window_bounds = array<i64: 1, 1, 16>}, {transform_indices = @transform_2, window_bounds = array<i64: 1, 1, 16>}, {pipeline_mode = #tpu.pipeline_mode<synchronous>, transform_indices = @transform_3, window_bounds = array<i64: 3, 16, 16>}, {pipeline_mode = #tpu.pipeline_mode<synchronous>, transform_indices = @transform_4, window_bounds = array<i64: 1, 16>}, {transform_indices = @transform_5, window_bounds = array<i64: 1, 16, 16>}, {transform_indices = @transform_6, window_bounds = array<i64: 1, 16, 16>}]} {
    %c0 = arith.constant 0 : index
    %c0_0 = arith.constant 0 : index
    %c0_1 = arith.constant 0 : index
    %0 = vector.load %arg1[%c0, %c0_0, %c0_1] : memref<1x16x16xbf16, #tpu.memory_space<vmem>>, vector<1x16x16xbf16>
    %1 = vector.shape_cast %0 : vector<1x16x16xbf16> to vector<16x16xbf16>
    %c0_2 = arith.constant 0 : index
    %c0_3 = arith.constant 0 : index
    %c0_4 = arith.constant 0 : index
    %2 = vector.load %arg2[%c0_2, %c0_3, %c0_4] : memref<1x1x16xf32, #tpu.memory_space<vmem>>, vector<1x1x16xf32>
    %3 = vector.shape_cast %2 : vector<1x1x16xf32> to vector<1x16xf32>
    %4 = arith.extf %1 : vector<16x16xbf16> to vector<16x16xf32>
    %5 = vector.broadcast %3 : vector<1x16xf32> to vector<16x16xf32>
    %6 = arith.mulf %5, %4 : vector<16x16xf32>
    %c0_5 = arith.constant 0 : index
    %c0_6 = arith.constant 0 : index
    %c0_7 = arith.constant 0 : index
    %7 = vector.load %arg3[%c0_5, %c0_6, %c0_7] : memref<1x1x16xf32, #tpu.memory_space<vmem>>, vector<1x1x16xf32>
    %8 = vector.shape_cast %7 : vector<1x1x16xf32> to vector<1x16xf32>
    %9 = vector.broadcast %8 : vector<1x16xf32> to vector<16x16xf32>
    %10 = arith.addf %6, %9 : vector<16x16xf32>
    %cst = arith.constant 0.000000e+00 : f32
    %11 = vector.broadcast %cst : f32 to vector<16x16xf32>
    %12 = arith.maximumf %10, %11 : vector<16x16xf32>
    %13 = arith.truncf %12 : vector<16x16xf32> to vector<16x16xbf16>
    %cst_8 = arith.constant 0.000000e+00 : f32
    %14 = vector.broadcast %cst_8 : f32 to vector<16x16xf32>
    %c0_9 = arith.constant 0 : index
    %c0_10 = arith.constant 0 : index
    %c0_11 = arith.constant 0 : index
    %15 = vector.load %arg4[%c0_9, %c0_10, %c0_11] : memref<3x16x16xbf16, #tpu.memory_space<vmem>>, vector<1x16x16xbf16>
    %16 = vector.shape_cast %15 : vector<1x16x16xbf16> to vector<16x16xbf16>
    %cst_12 = arith.constant dense<0.000000e+00> : vector<16x16xf32>
    %17 = tpu.matmul %13, %16, %cst_12 {dimension_numbers = #tpu.dot_dimension_numbers<[1], [0], [0], [1], [0, 0, 1, 1], [], []>} : vector<16x16xbf16>, vector<16x16xbf16>, vector<16x16xf32> -> vector<16x16xf32>
    %cst_13 = arith.constant 0.000000e+00 : f32
    %18 = vector.broadcast %cst_13 : f32 to vector<8x16xf32>
    %19 = vector.extract_strided_slice %17 {offsets = [0, 0], sizes = [8, 16], strides = [1, 1]} : vector<16x16xf32> to vector<8x16xf32>
    %20 = tpu.concatenate %18, %19 in 0 : vector<8x16xf32>, vector<8x16xf32> -> vector<16x16xf32>
    %21 = arith.addf %14, %20 : vector<16x16xf32>
    %c1 = arith.constant 1 : index
    %c0_14 = arith.constant 0 : index
    %c0_15 = arith.constant 0 : index
    %22 = vector.load %arg4[%c1, %c0_14, %c0_15] : memref<3x16x16xbf16, #tpu.memory_space<vmem>>, vector<1x16x16xbf16>
    %23 = vector.shape_cast %22 : vector<1x16x16xbf16> to vector<16x16xbf16>
    %cst_16 = arith.constant dense<0.000000e+00> : vector<16x16xf32>
    %24 = tpu.matmul %13, %23, %cst_16 {dimension_numbers = #tpu.dot_dimension_numbers<[1], [0], [0], [1], [0, 0, 1, 1], [], []>} : vector<16x16xbf16>, vector<16x16xbf16>, vector<16x16xf32> -> vector<16x16xf32>
    %25 = arith.addf %21, %24 : vector<16x16xf32>
    %c2 = arith.constant 2 : index
    %c0_17 = arith.constant 0 : index
    %c0_18 = arith.constant 0 : index
    %26 = vector.load %arg4[%c2, %c0_17, %c0_18] : memref<3x16x16xbf16, #tpu.memory_space<vmem>>, vector<1x16x16xbf16>
    %27 = vector.shape_cast %26 : vector<1x16x16xbf16> to vector<16x16xbf16>
    %cst_19 = arith.constant dense<0.000000e+00> : vector<16x16xf32>
    %28 = tpu.matmul %13, %27, %cst_19 {dimension_numbers = #tpu.dot_dimension_numbers<[1], [0], [0], [1], [0, 0, 1, 1], [], []>} : vector<16x16xbf16>, vector<16x16xbf16>, vector<16x16xf32> -> vector<16x16xf32>
    %cst_20 = arith.constant 0.000000e+00 : f32
    %29 = vector.broadcast %cst_20 : f32 to vector<8x16xf32>
    %30 = vector.extract_strided_slice %28 {offsets = [8, 0], sizes = [8, 16], strides = [1, 1]} : vector<16x16xf32> to vector<8x16xf32>
    %31 = tpu.concatenate %30, %29 in 0 : vector<8x16xf32>, vector<8x16xf32> -> vector<16x16xf32>
    %32 = arith.addf %25, %31 : vector<16x16xf32>
    %c0_21 = arith.constant 0 : index
    %c0_22 = arith.constant 0 : index
    %33 = vector.load %arg5[%c0_21, %c0_22] : memref<1x16xf32, #tpu.memory_space<vmem>>, vector<1x16xf32>
    %34 = vector.broadcast %33 : vector<1x16xf32> to vector<16x16xf32>
    %35 = arith.addf %32, %34 : vector<16x16xf32>
    %c0_23 = arith.constant 0 : index
    %c0_24 = arith.constant 0 : index
    %c0_25 = arith.constant 0 : index
    %36 = vector.load %arg6[%c0_23, %c0_24, %c0_25] : memref<1x16x16xbf16, #tpu.memory_space<vmem>>, vector<1x16x16xbf16>
    %37 = vector.shape_cast %36 : vector<1x16x16xbf16> to vector<16x16xbf16>
    %38 = arith.extf %37 : vector<16x16xbf16> to vector<16x16xf32>
    %39 = arith.addf %35, %38 : vector<16x16xf32>
    %40 = arith.truncf %39 : vector<16x16xf32> to vector<16x16xbf16>
    %c0_26 = arith.constant 0 : index
    %c0_27 = arith.constant 0 : index
    %c0_28 = arith.constant 0 : index
    %41 = vector.load %arg7[%c0_26, %c0_27, %c0_28] : memref<1x16x16xbf16, #tpu.memory_space<vmem>>, vector<1x16x16xbf16>
    %42 = vector.shape_cast %41 : vector<1x16x16xbf16> to vector<16x16xbf16>
    %43 = vector.shape_cast %40 : vector<16x16xbf16> to vector<1x16x16xbf16>
    tpu.vector_store %arg7[%c0_26, %c0_27, %c0_28], %43 {strides = array<i32>} : memref<1x16x16xbf16, #tpu.memory_space<vmem>>, vector<1x16x16xbf16>,
    return
  }
  func.func @transform_0(%arg0: i32) -> (i32, i32, i32) {
    %c0_i32 = arith.constant 0 : i32
    %c0_i32_0 = arith.constant 0 : i32
    %c0_i32_1 = arith.constant 0 : i32
    return %arg0, %c0_i32, %c0_i32_0 : i32, i32, i32
  }
  func.func @transform_1(%arg0: i32) -> (i32, i32, i32) {
    %c0_i32 = arith.constant 0 : i32
    %c0_i32_0 = arith.constant 0 : i32
    %c0_i32_1 = arith.constant 0 : i32
    return %arg0, %c0_i32, %c0_i32_0 : i32, i32, i32
  }
  func.func @transform_2(%arg0: i32) -> (i32, i32, i32) {
    %c0_i32 = arith.constant 0 : i32
    %c0_i32_0 = arith.constant 0 : i32
    %c0_i32_1 = arith.constant 0 : i32
    return %arg0, %c0_i32, %c0_i32_0 : i32, i32, i32
  }
  func.func @transform_3(%arg0: i32) -> (i32, i32, i32) {
    %c0_i32 = arith.constant 0 : i32
    %c0_i32_0 = arith.constant 0 : i32
    %c0_i32_1 = arith.constant 0 : i32
    %c0_i32_2 = arith.constant 0 : i32
    return %c0_i32, %c0_i32_0, %c0_i32_1 : i32, i32, i32
  }
  func.func @transform_4(%arg0: i32) -> (i32, i32) {
    %c0_i32 = arith.constant 0 : i32
    %c0_i32_0 = arith.constant 0 : i32
    %c0_i32_1 = arith.constant 0 : i32
    return %c0_i32, %c0_i32_0 : i32, i32
  }
  func.func @transform_5(%arg0: i32) -> (i32, i32, i32) {
    %c0_i32 = arith.constant 0 : i32
    %c0_i32_0 = arith.constant 0 : i32
    %c0_i32_1 = arith.constant 0 : i32
    return %arg0, %c0_i32, %c0_i32_0 : i32, i32, i32
  }
  func.func @transform_6(%arg0: i32) -> (i32, i32, i32) {
    %c0_i32 = arith.constant 0 : i32
    %c0_i32_0 = arith.constant 0 : i32
    %c0_i32_1 = arith.constant 0 : i32
    return %arg0, %c0_i32, %c0_i32_0 : i32, i32, i32
  }
}

</mosaic_0001>

<bundles_post_ra>
// kernel: gblock_forward.8
= control target key start
LH: loop header
LB: loop body
LE: loop exit
PB: predicated region body
PF: predicated region fallthrough
CT: control target
= control target key end

     0   :  { %s509_s12 = smov 0   ;;  %s551_s0 = inlined_call_operand.vmem [shape: bf16[2,16,8], index: 0, kind: input, shape index: {}]   ;;  %s552_s1 = inlined_call_operand.vmem [shape: bf16[3,8,16], index: 1, kind: input, shape index: {}]   ;;  %s553_s2 = inlined_call_operand.vmem [shape: f32[1,16], index: 2, kind: input, shape index: {}]   ;;  %s554_s3 = inlined_call_operand.vmem [shape: bf16[2,16,16], index: 3, kind: output, shape index: {}]  }
   0x1 LB: > { %s420_s13 = sadd.s32 4294967295, %s485_s12   ;;  %p424_p0 = scmp.ge.s32.totalorder %s485_s12, 1  ;;  %s485_s12 = sphi %s509_s12, %s13_s12  }
   0x2   : > { %p137_p1 = scmp.lt.s32.totalorder %s485_s12, 3 }
   0x4   : > { %p138_p2 = pnand %p424_p0, %p137_p1 }
   0x5   : > { %v174_v0 = vld [vmem:[%s552_s1] sm:$0xf] (!%p138_p2)  ;;  %vm184_vm0 = vcmask (!%p138_p2), 1043456   ;;  %p161_p3 = scmp.lt.s32.totalorder (!%p138_p2), %s420_s13, 1  ;;  %v487_v1 = vmov (!%p138_p2), 0.0   ;;  %vm488_vm1 = vmmov (!%p138_p2), 0  }
   0x6   : > { %141 = sbr.rel (%p138_p2) target bundleno = 249 (0xf9), region = 32  ;;  %450 = vmatprep.subr.bf16.mxu0 (!%p138_p2), %v487_v1  ;;  %v186_v2 = vsel (!%p138_p2), %vm184_vm0, %v174_v0, 0  ;;  %452 = vmatprep.mubr.msk.bf16.mxu0 (!%p138_p2), %vm488_vm1, %v487_v1  ;;  %v431_v3 = vld [vmem:[%s552_s1 + $0x4] sm:$0xf] (!%p138_p2)  ;;  %v433_v5 = vld [vmem:[%s552_s1 + $0x8] sm:$0xf] (!%p138_p2) }
   0x7   : > { %451 = vmatpush3.bf16.msra.mxu0 (!%p138_p2), %v186_v2  ;;  %456 = vmatprep.subr.bf16.mxu1 (!%p138_p2), %v487_v1  ;;  %v243_v4 = vsel (!%p138_p2), %vm184_vm0, %v431_v3, 0  ;;  %vm180_vm2 = vcmask (!%p138_p2), 64512   ;;  %v291_v7 = vsel (!%p138_p2), %vm184_vm0, %v433_v5, 0  ;;  %vm231_vm3 = vcmask (!%p138_p2), 1040384   ;;  %v435_v30 = vld [vmem:[%s553_s2] ss:$0 sm:$0xff] (!%p138_p2) }
   0x8   : > { %462 = vmatprep.subr.bf16.mxu0 (!%p138_p2), %v487_v1  ;;  %457 = vmatpush3.bf16.msra.mxu1 (!%p138_p2), %v243_v4  ;;  %vm336_vm4 = vcmask (!%p138_p2), 1046528   ;;  %vm362_vm5 = vcmask (!%p138_p2), 125952  }
   0x9   : > { %458 = vmatprep.mubr.msk.bf16.mxu1 (!%p138_p2), %vm488_vm1, %v487_v1 }
   0xd   : > { %s556_s13 = smov (!%p161_p3, %s420_s13), 1 }
   0xe   : > { %s440_s20 = sshll.u32 %s556_s13, 3 }
   0xf   : > { %s165_s23 = scalar_lea.vmem %s551_s0, %s440_s20  ;;  %s170_s28 = scalar_lea.vmem %s554_s3, %s440_s20 }
  0x10   : > { %v478_v6 = vld [vmem:[%s165_s23] sm:$0xff]  }
  0x11   : > { %453 = vmatmul.mubr.msk.bf16.vlgmr.msra.gmra.mrb[0].mxu0 %vm180_vm2, %v478_v6  ;;  %459 = vmatmul.mubr.msk.bf16.vlgmr.msra.gmra.mrb[0].mxu1 %vm180_vm2, %v478_v6 }
  0x12   : > { %463 = vmatpush3.bf16.msra.mxu0 %v291_v7  ;;  %464 = vmatprep.mubr.msk.bf16.mxu0 %vm488_vm1, %v487_v1 }
  0x19   : > { %465 = vmatmul.mubr.msk.bf16.vlgmr.msra.gmra.mrb[4].mxu0 %vm180_vm2, %v478_v6 }
  0xe4   : > { %v222_v8 = vpop.f32.mrb[0].mxu0  ;;  %v279_v9 = vpop.f32.mrb[0].mxu1 }
  0xe5   : > { %v232_v10 = vrot.slane %v222_v8, 7  ;;  %v454_v11 = vpop.f32.mrb[1].mxu0  ;;  %v460_v12 = vpop.f32.mrb[1].mxu1 }
  0xe6   : > { %v225_v13 = vpop.f32.mrb[2].mxu0  ;;  %v282_v14 = vpop.f32.mrb[2].mxu1 }
  0xe7   : > { %v233_v15 = vrot.slane %v225_v13, 7  ;;  %v455_v16 = vpop.f32.mrb[3].mxu0  ;;  %v237_v17 = vsel %vm231_vm3, 0.0, %v232_v10  ;;  %v461_v18 = vpop.f32.mrb[3].mxu1 }
  0xe8   : > { %v286_v19 = vadd.f32 %v279_v9, %v237_v17 }
  0xe9   : > { %v234_v20 = vsel %vm231_vm3, %v232_v10, %v233_v15 }
  0xea   : > { %v287_v21 = vadd.f32 %v282_v14, %v234_v20 }
  0xec   : > { %v327_v22 = vpop.f32.mrb[4].mxu0 }
  0xed   : > { %v466_v23 = vpop.f32.mrb[5].mxu0  ;;  %v337_v25 = vrot.slane %v327_v22, 1 }
  0xee   : > { %v330_v24 = vpop.f32.mrb[6].mxu0 }
  0xef   : > { %v338_v26 = vrot.slane %v330_v24, 1  ;;  %v467_v27 = vpop.f32.mrb[7].mxu0 }
  0xf1   : > { %v339_v28 = vsel %vm336_vm4, %v337_v25, %v338_v26  ;;  %v342_v29 = vsel %vm336_vm4, %v338_v26, 0.0 }
  0xf2   : > { %v343_v31 = vadd.f32 %v339_v28, %v286_v19  ;;  %v344_v32 = vadd.f32 %v342_v29, %v287_v21 }
  0xf4   : > { %v352_v33 = vadd.f32 %v435_v30, %v343_v31  ;;  %v353_v34 = vadd.f32 %v435_v30, %v344_v32 }
  0xf6   : > { %v442_v35 = vpack.c.bf16 %v352_v33, %v352_v33  ;;  %v443_v36 = vpack.c.bf16 %v353_v34, %v353_v34 }
  0xf8   : > { %363 = vst.msk [vmem:[%s170_s28] sm:$0xf] %vm362_vm5, %v442_v35  ;;  %364 = vst.msk [vmem:[%s170_s28 + $0x4] sm:$0xf] %vm362_vm5, %v443_v36 }
  0xf9 PF: > { %s13_s12 = sadd.s32 1, %s485_s12  }
  0xfa   : > { %p10_p4 = scmp.ge.s32.totalorder %s13_s12, 4  }
  0xfc   :  { %12 = sbr.rel (!%p10_p4) target bundleno = 1 (0x1), region = 64 }

// kernel: gblock_forward.7
= control target key start
LH: loop header
LB: loop body
LE: loop exit
PB: predicated region body
PF: predicated region fallthrough
CT: control target
= control target key end

     0   :  { %s1106_s30 = smov 0   ;;  %s1200_s0 = inlined_call_operand.vmem [shape: bf16[2,8,8], index: 0, kind: input, shape index: {}]   ;;  %s1201_s1 = inlined_call_operand.vmem [shape: f32[2,1,8], index: 1, kind: input, shape index: {}]   ;;  %s1202_s2 = inlined_call_operand.vmem [shape: f32[2,1,8], index: 2, kind: input, shape index: {}]   ;;  %s1203_s3 = inlined_call_operand.vmem [shape: bf16[2,8,8], index: 3, kind: input, shape index: {}]   ;;  %s1204_s4 = inlined_call_operand.vmem [shape: bf16[4,8,8], index: 4, kind: input, shape index: {}]   ;;  %s1205_s5 = inlined_call_operand.vmem [shape: f32[1,8], index: 5, kind: input, shape index: {}]   ;;  %s1206_s6 = inlined_call_operand.vmem [shape: bf16[4,8,16], index: 6, kind: input, shape index: {}]   ;;  %s1207_s7 = inlined_call_operand.vmem [shape: f32[1,16], index: 7, kind: input, shape index: {}]   ;;  %s1208_s8 = inlined_call_operand.vmem [shape: bf16[2,8,16], index: 8, kind: output, shape index: {0}]   ;;  %s1209_s9 = inlined_call_operand.vmem [shape: bf16[2,8,32], index: 9, kind: output, shape index: {1}]  }
   0x1 LB: > { %s939_s10 = sadd.s32 4294967295, %s1050_s30   ;;  %p943_p0 = scmp.ge.s32.totalorder %s1050_s30, 1  ;;  %s1050_s30 = sphi %s1106_s30, %s20_s30  }
   0x2   : > { %p314_p1 = scmp.lt.s32.totalorder %s1050_s30, 3 }
   0x4   : > { %p315_p2 = pnand %p943_p0, %p314_p1 }
   0x5   : > { %v951_v0 = vld [vmem:[%s1204_s4 + $0xc] sm:$0xf] (!%p315_p2)  ;;  %vm414_vm0 = vcmask (!%p315_p2), 1043456   ;;  %v950_v1 = vld [vmem:[%s1204_s4 + $0x4] sm:$0xf] (!%p315_p2)  ;;  %v1052_v2 = vmov (!%p315_p2), 0.0  }
   0x6   : > { %318 = sbr.rel (%p315_p2) target bundleno = 389 (0x185), region = 52  ;;  %984 = vmatprep.subr.bf16.mxu0 (!%p315_p2), %v1052_v2  ;;  %v416_v3 = vsel (!%p315_p2), %vm414_vm0, %v951_v0, 0  ;;  %990 = vmatprep.subr.bf16.mxu1 (!%p315_p2), %v1052_v2  ;;  %v464_v4 = vsel (!%p315_p2), %vm414_vm0, %v950_v1, 0  ;;  %p362_p3 = scmp.lt.s32.totalorder (!%p315_p2), %s939_s10, 1  ;;  %vm1053_vm1 = vmmov (!%p315_p2), 0   ;;  %vm410_vm2 = vcmask (!%p315_p2), 64512  }
   0x7   : > { %985 = vmatpush3.bf16.msra.mxu0 (!%p315_p2), %v416_v3  ;;  %991 = vmatpush3.bf16.msra.mxu1 (!%p315_p2), %v464_v4  ;;  %v516_v11 = vld [vmem:[%s1204_s4] sm:$0xf] (!%p315_p2)  ;;  %v955_v12 = vld [vmem:[%s1204_s4 + $0x8] sm:$0xf] (!%p315_p2)  ;;  %v959_v17 = vld [vmem:[%s1206_s6 + $0xc] sm:$0xf] (!%p315_p2) }
   0x8   : > { %986 = vmatprep.mubr.msk.bf16.mxu0 (!%p315_p2), %vm1053_vm1, %v1052_v2  ;;  %992 = vmatprep.mubr.msk.bf16.mxu1 (!%p315_p2), %vm1053_vm1, %v1052_v2  ;;  %v518_v15 = vsel (!%p315_p2), %vm414_vm0, %v516_v11, 0  ;;  %v566_v16 = vsel (!%p315_p2), %vm414_vm0, %v955_v12, 0  ;;  %v958_v18 = vld [vmem:[%s1206_s6 + $0x4] sm:$0xf] (!%p315_p2)  ;;  %v625_v19 = vsel (!%p315_p2), %vm414_vm0, %v959_v17, 0  ;;  %vm461_vm3 = vcmask (!%p315_p2), 1040384  }
   0x9   : > { %996 = vmatprep.subr.bf16.mxu0 (!%p315_p2), %v1052_v2  ;;  %1002 = vmatprep.subr.bf16.mxu1 (!%p315_p2), %v1052_v2  ;;  %v672_v20 = vsel (!%p315_p2), %vm414_vm0, %v958_v18, 0  ;;  %v724_v21 = vld [vmem:[%s1206_s6] sm:$0xf] (!%p315_p2)  ;;  %v963_v22 = vld [vmem:[%s1206_s6 + $0x8] sm:$0xf] (!%p315_p2)  ;;  %vm563_vm4 = vcmask (!%p315_p2), 1046528  }
   0xa   : > { %v726_v24 = vsel (!%p315_p2), %vm414_vm0, %v724_v21, 0  ;;  %v773_v25 = vsel (!%p315_p2), %vm414_vm0, %v963_v22, 0  ;;  %v954_v34 = vld [vmem:[%s1205_s5] ss:$0 sm:$0xff] (!%p315_p2)  ;;  %s1054_s23 = smov (!%p315_p2), 8   ;;  %s1055_s26 = smov (!%p315_p2), 16  }
   0xb   : > { %v962_v61 = vld [vmem:[%s1207_s7] ss:$0 sm:$0xff] (!%p315_p2)  ;;  %vm615_vm5 = vcmask (!%p315_p2), 125952   ;;  %vm820_vm6 = vcmask (!%p315_p2), 130048   ;;  %vm823_vm7 = vcmask (!%p315_p2), 257024  }
   0xd   : > { %s1211_s10 = smov (!%p362_p3, %s939_s10), 1 }
   0xe   : > { %s1124_s15 = sshll.u32 %s1211_s10, 2  ;;  %s368_s18 = scalar_lea.vmem %s1201_s1, %s1211_s10 }
   0xf   : > { %s365_s21 = scalar_lea.vmem %s1200_s0, %s1124_s15  ;;  %s371_s24 = scalar_lea.vmem %s1202_s2, %s1211_s10  ;;  %v948_v5 = vld [vmem:[%s368_s18] ss:$0 sm:$0xff] }
  0x10   : > { %v386_v6 = vld [vmem:[%s365_s21] sm:$0xf]  ;;  %s375_s16 = scalar_lea.vmem %s1203_s3, %s1124_s15  ;;  %s379_s29 = scalar_lea.vmem %s1208_s8, %s1124_s15 }
  0x11   : > { %v387_v7 = vunpack.c.l.bf16 %v386_v6  ;;  %v949_v8 = vld [vmem:[%s371_s24] ss:$0 sm:$0xff]  ;;  %s383_s12 = scalar_lea.vmem %s1209_s9, %s1124_s15 }
  0x12   : > { %v405_v23 = vld [vmem:[%s375_s16] sm:$0xf] }
  0x13   : > { %v394_v9 = vmul.f32 %v948_v5, %v387_v7 }
  0x15   : > { %v402_v10 = vadd.f32 %v949_v8, %v394_v9 }
  0x17   : > { %v403_v13 = vmax.f32 %v402_v10, 0.0 }
  0x19   : > { %v404_v14 = vpack.c.bf16 %v403_v13, %v403_v13 }
  0x1b   : > { %987 = vmatmul.mubr.msk.bf16.vlgmr.msra.gmra.mrb[0].mxu0 %vm410_vm2, %v404_v14  ;;  %993 = vmatmul.mubr.msk.bf16.vlgmr.msra.gmra.mrb[0].mxu1 %vm410_vm2, %v404_v14 }
  0x1c   : > { %997 = vmatpush3.bf16.msra.mxu0 %v518_v15  ;;  %1003 = vmatpush3.bf16.msra.mxu1 %v566_v16 }
  0x1d   : > { %998 = vmatprep.mubr.msk.bf16.mxu0 %vm1053_vm1, %v1052_v2  ;;  %1004 = vmatprep.mubr.msk.bf16.mxu1 %vm1053_vm1, %v1052_v2 }
  0x1e   : > { %1008 = vmatprep.subr.bf16.mxu0 %v1052_v2  ;;  %1014 = vmatprep.subr.bf16.mxu1 %v1052_v2 }
  0x23   : > { %999 = vmatmul.mubr.msk.bf16.vlgmr.msra.gmra.mrb[4].mxu0 %vm410_vm2, %v404_v14  ;;  %1005 = vmatmul.mubr.msk.bf16.vlgmr.msra.gmra.mrb[4].mxu1 %vm410_vm2, %v404_v14 }
  0x24   : > { %1009 = vmatpush3.bf16.msra.mxu0 %v625_v19  ;;  %1015 = vmatpush3.bf16.msra.mxu1 %v672_v20 }
  0x25   : > { %1010 = vmatprep.mubr.msk.bf16.mxu0 %vm1053_vm1, %v1052_v2  ;;  %1016 = vmatprep.mubr.msk.bf16.mxu1 %vm1053_vm1, %v1052_v2 }
  0x26   : > { %1020 = vmatprep.subr.bf16.mxu0 %v1052_v2  ;;  %1026 = vmatprep.subr.bf16.mxu1 %v1052_v2 }
  0x2b   : > { %1011 = vmatmul.mubr.msk.bf16.vlgmr.msra.gmra.mrb[8].mxu0 %vm410_vm2, %v405_v23  ;;  %1017 = vmatmul.mubr.msk.bf16.vlgmr.msra.gmra.mrb[8].mxu1 %vm410_vm2, %v405_v23 }
  0x2c   : > { %1021 = vmatpush3.bf16.msra.mxu0 %v726_v24  ;;  %1027 = vmatpush3.bf16.msra.mxu1 %v773_v25 }
  0x2d   : > { %1022 = vmatprep.mubr.msk.bf16.mxu0 %vm1053_vm1, %v1052_v2  ;;  %1028 = vmatprep.mubr.msk.bf16.mxu1 %vm1053_vm1, %v1052_v2 }
  0x33   : > { %1023 = vmatmul.mubr.msk.bf16.vlgmr.msra.gmra.mrb[12].mxu0 %vm410_vm2, %v405_v23  ;;  %1029 = vmatmul.mubr.msk.bf16.vlgmr.msra.gmra.mrb[12].mxu1 %vm410_vm2, %v405_v23 }
  0xee   : > { %v452_v26 = vpop.f32.mrb[0].mxu0  ;;  %v500_v27 = vpop.f32.mrb[0].mxu1 }
  0xef   : > { %v459_v28 = vrot.slane %v452_v26, 7  ;;  %v988_v29 = vpop.f32.mrb[1].mxu0  ;;  %v994_v30 = vpop.f32.mrb[1].mxu1 }
  0xf0   : > { %v455_v31 = vpop.f32.mrb[2].mxu0  ;;  %v503_v32 = vpop.f32.mrb[2].mxu1 }
  0xf1   : > { %v462_v33 = vsel %vm461_vm3, 0.0, %v459_v28  ;;  %v989_v35 = vpop.f32.mrb[3].mxu0  ;;  %v995_v36 = vpop.f32.mrb[3].mxu1 }
  0xf2   : > { %v501_v37 = vadd.f32 %v500_v27, %v462_v33 }
  0xf4   : > { %v513_v38 = vadd.f32 %v954_v34, %v501_v37 }
  0xf6   : > { %v554_v39 = vpop.f32.mrb[4].mxu0  ;;  %v602_v40 = vpop.f32.mrb[4].mxu1 }
  0xf7   : > { %v561_v41 = vrot.slane %v554_v39, 1  ;;  %v1000_v42 = vpop.f32.mrb[5].mxu0  ;;  %v1006_v43 = vpop.f32.mrb[5].mxu1 }
  0xf8   : > { %v557_v44 = vpop.f32.mrb[6].mxu0  ;;  %v605_v45 = vpop.f32.mrb[6].mxu1 }
  0xf9   : > { %v564_v46 = vsel %vm563_vm4, %v561_v41, 0.0  ;;  %v1001_v47 = vpop.f32.mrb[7].mxu0  ;;  %v1007_v48 = vpop.f32.mrb[7].mxu1 }
  0xfa   : > { %v603_v49 = vadd.f32 %v602_v40, %v564_v46 }
  0xfc   : > { %v608_v50 = vadd.f32 %v954_v34, %v603_v49 }
  0xfe   : > { %v708_v51 = vpop.f32.mrb[8].mxu1  ;;  %610 = vrot.lane.b32.xlu0 %v608_v50, %s1054_s23  ;;  %v661_v52 = vpop.f32.mrb[8].mxu0 }
  0xff   : > { %v668_v53 = vrot.slane %v661_v52, 7  ;;  %v1012_v54 = vpop.f32.mrb[9].mxu0  ;;  %v1018_v55 = vpop.f32.mrb[9].mxu1 }
 0x100   : > { %v664_v56 = vpop.f32.mrb[10].mxu0  ;;  %v711_v57 = vpop.f32.mrb[10].mxu1 }
 0x101   : > { %v670_v58 = vsel %vm461_vm3, 0.0, %v668_v53  ;;  %v1013_v59 = vpop.f32.mrb[11].mxu0  ;;  %v1019_v60 = vpop.f32.mrb[11].mxu1 }
 0x102   : > { %v709_v62 = vadd.f32 %v708_v51, %v670_v58 }
 0x104   : > { %v721_v63 = vadd.f32 %v962_v61, %v709_v62 }
 0x106   : > { %v762_v0 = vpop.f32.mrb[12].mxu0  ;;  %v809_v1 = vpop.f32.mrb[12].mxu1 }
 0x107   : > { %v769_v2 = vrot.slane %v762_v0, 1  ;;  %v1024_v3 = vpop.f32.mrb[13].mxu0  ;;  %v1030_v4 = vpop.f32.mrb[13].mxu1 }
 0x108   : > { %v765_v5 = vpop.f32.mrb[14].mxu0  ;;  %v812_v6 = vpop.f32.mrb[14].mxu1 }
 0x109   : > { %v771_v7 = vsel %vm563_vm4, %v769_v2, 0.0  ;;  %v1025_v8 = vpop.f32.mrb[15].mxu0  ;;  %v1031_v9 = vpop.f32.mrb[15].mxu1 }
 0x10a   : > { %v810_v10 = vadd.f32 %v809_v1, %v771_v7 }
 0x10c   : > { %v815_v11 = vadd.f32 %v962_v61, %v810_v10 }
 0x10e   : > { %817 = vrot.lane.b32.xlu0 %v815_v11, %s1055_s26 }
 0x170   : > { %v611_v12 = vpop.permute.xlu0 %610 }
 0x171   : > { %v613_v13 = vsel %vm410_vm2, %v513_v38, %v611_v12 }
 0x172   : > { %v614_v14 = vpack.c.bf16 %v613_v13, %v613_v13 }
 0x174   : > { %616 = vst.msk [vmem:[%s379_s29] sm:$0xf] %vm615_vm5, %v614_v14 }
 0x180   : > { %v818_v15 = vpop.permute.xlu0 %817 }
 0x181   : > { %v821_v16 = vsel %vm820_vm6, %v721_v63, %v818_v15 }
 0x182   : > { %v822_v17 = vpack.c.bf16 %v821_v16, %v821_v16 }
 0x184   : > { %824 = vst.msk [vmem:[%s383_s12] sm:$0xf] %vm823_vm7, %v822_v17 }
 0x185 PF: > { %s20_s30 = sadd.s32 1, %s1050_s30  }
 0x186   : > { %p17_p4 = scmp.ge.s32.totalorder %s20_s30, 4  }
 0x188   :  { %19 = sbr.rel (!%p17_p4) target bundleno = 1 (0x1), region = 109 }

// kernel: gblock_forward.9
= control target key start
LH: loop header
LB: loop body
LE: loop exit
PB: predicated region body
PF: predicated region fallthrough
CT: control target
= control target key end

     0   :  { %s737_s21 = smov 0   ;;  %s783_s0 = inlined_call_operand.vmem [shape: bf16[2,16,16], index: 0, kind: input, shape index: {}]   ;;  %s784_s1 = inlined_call_operand.vmem [shape: f32[2,1,16], index: 1, kind: input, shape index: {}]   ;;  %s785_s2 = inlined_call_operand.vmem [shape: f32[2,1,16], index: 2, kind: input, shape index: {}]   ;;  %s786_s3 = inlined_call_operand.vmem [shape: bf16[3,16,16], index: 3, kind: input, shape index: {}]   ;;  %s787_s4 = inlined_call_operand.vmem [shape: f32[1,16], index: 4, kind: input, shape index: {}]   ;;  %s788_s5 = inlined_call_operand.vmem [shape: bf16[2,16,16], index: 5, kind: input, shape index: {}]   ;;  %s789_s6 = inlined_call_operand.vmem [shape: bf16[2,16,16], index: 6, kind: output, shape index: {}]  }
   0x1 LB: > { %s614_s22 = sadd.s32 4294967295, %s698_s21   ;;  %p618_p0 = scmp.ge.s32.totalorder %s698_s21, 1  ;;  %s698_s21 = sphi %s737_s21, %s16_s21  }
   0x2   : > { %p238_p1 = scmp.lt.s32.totalorder %s698_s21, 3 }
   0x4   : > { %p239_p2 = pnand %p618_p0, %p238_p1 }
   0x5   : > { %v689_v0 = vld [vmem:[%s786_s3] sm:$0xff] (!%p239_p2)   ;;  %v700_v1 = vmov (!%p239_p2), 0.0   ;;  %p279_p3 = scmp.lt.s32.totalorder (!%p239_p2), %s614_s22, 1  ;;  %v690_v2 = vld [vmem:[%s786_s3 + $0x8] sm:$0xff] (!%p239_p2)   ;;  %vm701_vm0 = vmmov (!%p239_p2), 0   ;;  %vm334_vm1 = vcmask (!%p239_p2), 130048  }
   0x6   : > { %242 = sbr.rel (%p239_p2) target bundleno = 261 (0x105), region = 44  ;;  %661 = vmatprep.subr.bf16.mxu0 (!%p239_p2), %v700_v1  ;;  %667 = vmatprep.subr.bf16.mxu1 (!%p239_p2), %v700_v1  ;;  %v691_v14 = vld [vmem:[%s786_s3 + $0x10] sm:$0xff] (!%p239_p2)   ;;  %vm381_vm2 = vcmask (!%p239_p2), 1041408   ;;  %vm494_vm3 = vcmask (!%p239_p2), 1045504   ;;  %v637_v39 = vld [vmem:[%s787_s4] ss:$0 sm:$0xff] (!%p239_p2) }
   0x7   : > { %662 = vmatpush3.bf16.msra.mxu0 (!%p239_p2), %v689_v0  ;;  %663 = vmatprep.mubr.msk.bf16.mxu0 (!%p239_p2), %vm701_vm0, %v700_v1  ;;  %vm526_vm4 = vcmask (!%p239_p2), 125952  }
   0x8   : > { %673 = vmatprep.subr.bf16.mxu0 (!%p239_p2), %v700_v1  ;;  %668 = vmatpush3.bf16.msra.mxu1 (!%p239_p2), %v690_v2 }
   0x9   : > { %669 = vmatprep.mubr.msk.bf16.mxu1 (!%p239_p2), %vm701_vm0, %v700_v1 }
   0xd   : > { %s791_s22 = smov (!%p279_p3, %s614_s22), 1 }
   0xe   : > { %s753_s27 = sshll.u32 %s791_s22, 3  ;;  %s286_s30 = scalar_lea.vmem %s784_s1, %s791_s22 }
   0xf   : > { %s283_s9 = scalar_lea.vmem %s783_s0, %s753_s27  ;;  %s289_s12 = scalar_lea.vmem %s785_s2, %s791_s22  ;;  %v625_v4 = vld [vmem:[%s286_s30] ss:$0 sm:$0xff] }
  0x10   : > { %v648_v3 = vld [vmem:[%s283_s9] sm:$0xff]   ;;  %s294_s17 = scalar_lea.vmem %s788_s5, %s753_s27  ;;  %s299_s23 = scalar_lea.vmem %s789_s6, %s753_s27 }
  0x11   : > { %v649_v5 = vunpack.c.l.bf16 %v648_v3  ;;  %v650_v6 = vunpack.c.h.bf16 %v648_v3  ;;  %v626_v7 = vld [vmem:[%s289_s12] ss:$0 sm:$0xff] }
  0x12   : > { %v652_v35 = vld [vmem:[%s294_s17] sm:$0xff]  }
  0x13   : > { %v312_v8 = vmul.f32 %v649_v5, %v625_v4  ;;  %v313_v9 = vmul.f32 %v650_v6, %v625_v4  ;;  %v653_v42 = vunpack.c.l.bf16 %v652_v35  ;;  %v654_v43 = vunpack.c.h.bf16 %v652_v35 }
  0x15   : > { %v321_v10 = vadd.f32 %v626_v7, %v312_v8  ;;  %v322_v11 = vadd.f32 %v626_v7, %v313_v9 }
  0x17   : > { %v323_v12 = vmax.f32 %v321_v10, 0.0  ;;  %v324_v13 = vmax.f32 %v322_v11, 0.0 }
  0x19   : > { %v325_v15 = vpack.c.bf16 %v324_v13, %v323_v12 }
  0x1b   : > { %664 = vmatmul.mubr.msk.bf16.vlgmr.msra.gmra.mrb[0].mxu0 %vm334_vm1, %v325_v15  ;;  %670 = vmatmul.mubr.msk.bf16.vlgmr.msra.gmra.mrb[0].mxu1 %vm334_vm1, %v325_v15 }
  0x1c   : > { %674 = vmatpush3.bf16.msra.mxu0 %v691_v14  ;;  %675 = vmatprep.mubr.msk.bf16.mxu0 %vm701_vm0, %v700_v1 }
  0x23   : > { %676 = vmatmul.mubr.msk.bf16.vlgmr.msra.gmra.mrb[4].mxu0 %vm334_vm1, %v325_v15 }
  0xee   : > { %v372_v16 = vpop.f32.mrb[0].mxu0  ;;  %v433_v17 = vpop.f32.mrb[0].mxu1 }
  0xef   : > { %v382_v18 = vrot.slane %v372_v16, 6  ;;  %v665_v19 = vpop.f32.mrb[1].mxu0  ;;  %v671_v20 = vpop.f32.mrb[1].mxu1 }
  0xf0   : > { %v375_v21 = vpop.f32.mrb[2].mxu0  ;;  %v436_v22 = vpop.f32.mrb[2].mxu1 }
  0xf1   : > { %v383_v23 = vrot.slane %v375_v21, 6  ;;  %v666_v24 = vpop.f32.mrb[3].mxu0  ;;  %v387_v25 = vsel %vm381_vm2, 0.0, %v382_v18  ;;  %v672_v26 = vpop.f32.mrb[3].mxu1 }
  0xf2   : > { %v440_v27 = vadd.f32 %v433_v17, %v387_v25 }
  0xf3   : > { %v384_v28 = vsel %vm381_vm2, %v382_v18, %v383_v23 }
  0xf4   : > { %v441_v29 = vadd.f32 %v436_v22, %v384_v28 }
  0xf6   : > { %v485_v30 = vpop.f32.mrb[4].mxu0 }
  0xf7   : > { %v677_v31 = vpop.f32.mrb[5].mxu0  ;;  %v495_v33 = vrot.slane %v485_v30, 2 }
  0xf8   : > { %v488_v32 = vpop.f32.mrb[6].mxu0 }
  0xf9   : > { %v496_v34 = vrot.slane %v488_v32, 2  ;;  %v678_v36 = vpop.f32.mrb[7].mxu0 }
  0xfb   : > { %v497_v37 = vsel %vm494_vm3, %v495_v33, %v496_v34  ;;  %v500_v38 = vsel %vm494_vm3, %v496_v34, 0.0 }
  0xfc   : > { %v501_v40 = vadd.f32 %v497_v37, %v440_v27  ;;  %v502_v41 = vadd.f32 %v500_v38, %v441_v29 }
  0xfe   : > { %v510_v44 = vadd.f32 %v637_v39, %v501_v40  ;;  %v511_v45 = vadd.f32 %v637_v39, %v502_v41 }
 0x100   : > { %v516_v46 = vadd.f32 %v653_v42, %v510_v44  ;;  %v517_v47 = vadd.f32 %v654_v43, %v511_v45 }
 0x102   : > { %v645_v48 = vpack.c.bf16 %v516_v46, %v516_v46  ;;  %v646_v49 = vpack.c.bf16 %v517_v47, %v517_v47 }
 0x104   : > { %527 = vst.msk [vmem:[%s299_s23] sm:$0xf] %vm526_vm4, %v645_v48  ;;  %528 = vst.msk [vmem:[%s299_s23 + $0x4] sm:$0xf] %vm526_vm4, %v646_v49 }
 0x105 PF: > { %s16_s21 = sadd.s32 1, %s698_s21  }
 0x106   : > { %p13_p4 = scmp.ge.s32.totalorder %s16_s21, 4  }
 0x108   :  { %15 = sbr.rel (!%p13_p4) target bundleno = 1 (0x1), region = 85 }

// kernel: gblock_forward.10
= control target key start
LH: loop header
LB: loop body
LE: loop exit
PB: predicated region body
PF: predicated region fallthrough
CT: control target
= control target key end

     0   :  { %s659_s18 = smov 0   ;;  %s710_s0 = inlined_call_operand.vmem [shape: bf16[2,16,16], index: 0, kind: input, shape index: {}]   ;;  %s711_s1 = inlined_call_operand.vmem [shape: f32[2,1,16], index: 1, kind: input, shape index: {}]   ;;  %s712_s2 = inlined_call_operand.vmem [shape: f32[2,1,16], index: 2, kind: input, shape index: {}]   ;;  %s713_s3 = inlined_call_operand.vmem [shape: bf16[3,16,16], index: 3, kind: input, shape index: {}]   ;;  %s714_s4 = inlined_call_operand.vmem [shape: f32[1,16], index: 4, kind: input, shape index: {}]   ;;  %s715_s5 = inlined_call_operand.vmem [shape: bf16[2,16,16], index: 5, kind: output, shape index: {}]  }
   0x1 LB: > { %s548_s19 = sadd.s32 4294967295, %s625_s18   ;;  %p552_p0 = scmp.ge.s32.totalorder %s625_s18, 1  ;;  %s625_s18 = sphi %s659_s18, %s15_s18  }
   0x2   : > { %p203_p1 = scmp.lt.s32.totalorder %s625_s18, 3 }
   0x4   : > { %p204_p2 = pnand %p552_p0, %p203_p1 }
   0x5   : > { %v616_v0 = vld [vmem:[%s713_s3] sm:$0xff] (!%p204_p2)   ;;  %v627_v1 = vmov (!%p204_p2), 0.0   ;;  %p237_p3 = scmp.lt.s32.totalorder (!%p204_p2), %s548_s19, 1  ;;  %v617_v2 = vld [vmem:[%s713_s3 + $0x8] sm:$0xff] (!%p204_p2)   ;;  %vm628_vm0 = vmmov (!%p204_p2), 0   ;;  %vm287_vm1 = vcmask (!%p204_p2), 130048  }
   0x6   : > { %207 = sbr.rel (%p204_p2) target bundleno = 259 (0x103), region = 40  ;;  %588 = vmatprep.subr.bf16.mxu0 (!%p204_p2), %v627_v1  ;;  %594 = vmatprep.subr.bf16.mxu1 (!%p204_p2), %v627_v1  ;;  %v618_v14 = vld [vmem:[%s713_s3 + $0x10] sm:$0xff] (!%p204_p2)   ;;  %vm334_vm2 = vcmask (!%p204_p2), 1043456   ;;  %v569_v38 = vld [vmem:[%s714_s4] ss:$0 sm:$0xff] (!%p204_p2)  ;;  %vm472_vm3 = vcmask (!%p204_p2), 125952  }
   0x7   : > { %589 = vmatpush3.bf16.msra.mxu0 (!%p204_p2), %v616_v0  ;;  %590 = vmatprep.mubr.msk.bf16.mxu0 (!%p204_p2), %vm628_vm0, %v627_v1 }
   0x8   : > { %600 = vmatprep.subr.bf16.mxu0 (!%p204_p2), %v627_v1  ;;  %595 = vmatpush3.bf16.msra.mxu1 (!%p204_p2), %v617_v2 }
   0x9   : > { %596 = vmatprep.mubr.msk.bf16.mxu1 (!%p204_p2), %vm628_vm0, %v627_v1 }
   0xd   : > { %s717_s19 = smov (!%p237_p3, %s548_s19), 1 }
   0xe   : > { %s574_s24 = sshll.u32 %s717_s19, 3  ;;  %s244_s27 = scalar_lea.vmem %s711_s1, %s717_s19 }
   0xf   : > { %s241_s30 = scalar_lea.vmem %s710_s0, %s574_s24  ;;  %s247_s8 = scalar_lea.vmem %s712_s2, %s717_s19  ;;  %v557_v4 = vld [vmem:[%s244_s27] ss:$0 sm:$0xff] }
  0x10   : > { %v579_v3 = vld [vmem:[%s241_s30] sm:$0xff]   ;;  %s252_s15 = scalar_lea.vmem %s715_s5, %s574_s24 }
  0x11   : > { %v580_v5 = vunpack.c.l.bf16 %v579_v3  ;;  %v581_v6 = vunpack.c.h.bf16 %v579_v3  ;;  %v558_v7 = vld [vmem:[%s247_s8] ss:$0 sm:$0xff] }
  0x13   : > { %v265_v8 = vmul.f32 %v580_v5, %v557_v4  ;;  %v266_v9 = vmul.f32 %v581_v6, %v557_v4 }
  0x15   : > { %v274_v10 = vadd.f32 %v558_v7, %v265_v8  ;;  %v275_v11 = vadd.f32 %v558_v7, %v266_v9 }
  0x17   : > { %v276_v12 = vmax.f32 %v274_v10, 0.0  ;;  %v277_v13 = vmax.f32 %v275_v11, 0.0 }
  0x19   : > { %v278_v15 = vpack.c.bf16 %v277_v13, %v276_v12 }
  0x1b   : > { %591 = vmatmul.mubr.msk.bf16.vlgmr.msra.gmra.mrb[0].mxu0 %vm287_vm1, %v278_v15  ;;  %597 = vmatmul.mubr.msk.bf16.vlgmr.msra.gmra.mrb[0].mxu1 %vm287_vm1, %v278_v15 }
  0x1c   : > { %601 = vmatpush3.bf16.msra.mxu0 %v618_v14  ;;  %602 = vmatprep.mubr.msk.bf16.mxu0 %vm628_vm0, %v627_v1 }
  0x23   : > { %603 = vmatmul.mubr.msk.bf16.vlgmr.msra.gmra.mrb[4].mxu0 %vm287_vm1, %v278_v15 }
  0xee   : > { %v325_v16 = vpop.f32.mrb[0].mxu0  ;;  %v386_v17 = vpop.f32.mrb[0].mxu1 }
  0xef   : > { %v335_v18 = vrot.slane %v325_v16, 4  ;;  %v592_v19 = vpop.f32.mrb[1].mxu0  ;;  %v598_v20 = vpop.f32.mrb[1].mxu1 }
  0xf0   : > { %v328_v21 = vpop.f32.mrb[2].mxu0  ;;  %v389_v22 = vpop.f32.mrb[2].mxu1 }
  0xf1   : > { %v336_v23 = vrot.slane %v328_v21, 4  ;;  %v593_v24 = vpop.f32.mrb[3].mxu0  ;;  %v340_v25 = vsel %vm334_vm2, 0.0, %v335_v18  ;;  %v599_v26 = vpop.f32.mrb[3].mxu1 }
  0xf2   : > { %v393_v27 = vadd.f32 %v386_v17, %v340_v25 }
  0xf3   : > { %v337_v28 = vsel %vm334_vm2, %v335_v18, %v336_v23 }
  0xf4   : > { %v394_v29 = vadd.f32 %v389_v22, %v337_v28 }
  0xf6   : > { %v438_v30 = vpop.f32.mrb[4].mxu0 }
  0xf7   : > { %v604_v31 = vpop.f32.mrb[5].mxu0  ;;  %v447_v33 = vrot.slane %v438_v30, 4 }
  0xf8   : > { %v441_v32 = vpop.f32.mrb[6].mxu0 }
  0xf9   : > { %v448_v34 = vrot.slane %v441_v32, 4  ;;  %v605_v35 = vpop.f32.mrb[7].mxu0 }
  0xfb   : > { %v449_v36 = vsel %vm334_vm2, %v447_v33, %v448_v34  ;;  %v452_v37 = vsel %vm334_vm2, %v448_v34, 0.0 }
  0xfc   : > { %v453_v39 = vadd.f32 %v449_v36, %v393_v27  ;;  %v454_v40 = vadd.f32 %v452_v37, %v394_v29 }
  0xfe   : > { %v462_v41 = vadd.f32 %v569_v38, %v453_v39  ;;  %v463_v42 = vadd.f32 %v569_v38, %v454_v40 }
 0x100   : > { %v576_v43 = vpack.c.bf16 %v462_v41, %v462_v41  ;;  %v577_v44 = vpack.c.bf16 %v463_v42, %v463_v42 }
 0x102   : > { %473 = vst.msk [vmem:[%s252_s15] sm:$0xf] %vm472_vm3, %v576_v43  ;;  %474 = vst.msk [vmem:[%s252_s15 + $0x4] sm:$0xf] %vm472_vm3, %v577_v44 }
 0x103 PF: > { %s15_s18 = sadd.s32 1, %s625_s18  }
 0x104   : > { %p12_p4 = scmp.ge.s32.totalorder %s15_s18, 4  }
 0x106   :  { %14 = sbr.rel (!%p12_p4) target bundleno = 1 (0x1), region = 78 }

// kernel: gblock_forward.11
= control target key start
LH: loop header
LB: loop body
LE: loop exit
PB: predicated region body
PF: predicated region fallthrough
CT: control target
= control target key end

     0   :  { %s716_s21 = smov 0   ;;  %s762_s0 = inlined_call_operand.vmem [shape: bf16[2,16,16], index: 0, kind: input, shape index: {}]   ;;  %s763_s1 = inlined_call_operand.vmem [shape: f32[2,1,16], index: 1, kind: input, shape index: {}]   ;;  %s764_s2 = inlined_call_operand.vmem [shape: f32[2,1,16], index: 2, kind: input, shape index: {}]   ;;  %s765_s3 = inlined_call_operand.vmem [shape: bf16[3,16,16], index: 3, kind: input, shape index: {}]   ;;  %s766_s4 = inlined_call_operand.vmem [shape: f32[1,16], index: 4, kind: input, shape index: {}]   ;;  %s767_s5 = inlined_call_operand.vmem [shape: bf16[2,16,16], index: 5, kind: input, shape index: {}]   ;;  %s768_s6 = inlined_call_operand.vmem [shape: bf16[2,16,16], index: 6, kind: output, shape index: {}]  }
   0x1 LB: > { %s593_s22 = sadd.s32 4294967295, %s677_s21   ;;  %p597_p0 = scmp.ge.s32.totalorder %s677_s21, 1  ;;  %s677_s21 = sphi %s716_s21, %s16_s21  }
   0x2   : > { %p238_p1 = scmp.lt.s32.totalorder %s677_s21, 3 }
   0x4   : > { %p239_p2 = pnand %p597_p0, %p238_p1 }
   0x5   : > { %v668_v0 = vld [vmem:[%s765_s3] sm:$0xff] (!%p239_p2)   ;;  %v679_v1 = vmov (!%p239_p2), 0.0   ;;  %v669_v2 = vld [vmem:[%s765_s3 + $0x8] sm:$0xff] (!%p239_p2)   ;;  %vm680_vm0 = vmmov (!%p239_p2), 0   ;;  %p279_p3 = scmp.lt.s32.totalorder (!%p239_p2), %s593_s22, 1  ;;  %vm334_vm1 = vcmask (!%p239_p2), 130048  }
   0x6   : > { %242 = sbr.rel (%p239_p2) target bundleno = 258 (0x102), region = 44  ;;  %640 = vmatprep.subr.bf16.mxu0 (!%p239_p2), %v679_v1  ;;  %646 = vmatprep.subr.bf16.mxu1 (!%p239_p2), %v679_v1  ;;  %v670_v14 = vld [vmem:[%s765_s3 + $0x10] sm:$0xff] (!%p239_p2)   ;;  %v616_v23 = vld [vmem:[%s766_s4] ss:$0 sm:$0xff] (!%p239_p2)  ;;  %vm505_vm2 = vcmask (!%p239_p2), 125952  }
   0x7   : > { %641 = vmatpush3.bf16.msra.mxu0 (!%p239_p2), %v668_v0  ;;  %642 = vmatprep.mubr.msk.bf16.mxu0 (!%p239_p2), %vm680_vm0, %v679_v1 }
   0x8   : > { %647 = vmatpush3.bf16.msra.mxu1 (!%p239_p2), %v669_v2  ;;  %648 = vmatprep.mubr.msk.bf16.mxu1 (!%p239_p2), %vm680_vm0, %v679_v1 }
   0x9   : > { %652 = vmatprep.subr.bf16.mxu0 (!%p239_p2), %v679_v1 }
   0xd   : > { %s770_s22 = smov (!%p279_p3, %s593_s22), 1 }
   0xe   : > { %s732_s27 = sshll.u32 %s770_s22, 3  ;;  %s286_s30 = scalar_lea.vmem %s763_s1, %s770_s22 }
   0xf   : > { %s283_s9 = scalar_lea.vmem %s762_s0, %s732_s27  ;;  %s289_s12 = scalar_lea.vmem %s764_s2, %s770_s22  ;;  %v604_v4 = vld [vmem:[%s286_s30] ss:$0 sm:$0xff] }
  0x10   : > { %v627_v3 = vld [vmem:[%s283_s9] sm:$0xff]   ;;  %s294_s17 = scalar_lea.vmem %s767_s5, %s732_s27  ;;  %s299_s23 = scalar_lea.vmem %s768_s6, %s732_s27 }
  0x11   : > { %v628_v5 = vunpack.c.l.bf16 %v627_v3  ;;  %v629_v6 = vunpack.c.h.bf16 %v627_v3  ;;  %v605_v7 = vld [vmem:[%s289_s12] ss:$0 sm:$0xff] }
  0x12   : > { %v631_v18 = vld [vmem:[%s294_s17] sm:$0xff]  }
  0x13   : > { %v312_v8 = vmul.f32 %v628_v5, %v604_v4  ;;  %v313_v9 = vmul.f32 %v629_v6, %v604_v4  ;;  %v633_v25 = vunpack.c.h.bf16 %v631_v18  ;;  %v632_v35 = vunpack.c.l.bf16 %v631_v18 }
  0x15   : > { %v321_v10 = vadd.f32 %v605_v7, %v312_v8  ;;  %v322_v11 = vadd.f32 %v605_v7, %v313_v9 }
  0x17   : > { %v323_v12 = vmax.f32 %v321_v10, 0.0  ;;  %v324_v13 = vmax.f32 %v322_v11, 0.0 }
  0x19   : > { %v325_v15 = vpack.c.bf16 %v324_v13, %v323_v12 }
  0x1b   : > { %643 = vmatmul.mubr.msk.bf16.vlgmr.msra.gmra.mrb[0].mxu0 %vm334_vm1, %v325_v15  ;;  %649 = vmatmul.mubr.msk.bf16.vlgmr.msra.gmra.mrb[0].mxu1 %vm334_vm1, %v325_v15 }
  0x1c   : > { %653 = vmatpush3.bf16.msra.mxu0 %v670_v14  ;;  %654 = vmatprep.mubr.msk.bf16.mxu0 %vm680_vm0, %v679_v1 }
  0x23   : > { %655 = vmatmul.mubr.msk.bf16.vlgmr.msra.gmra.mrb[4].mxu0 %vm334_vm1, %v325_v15 }
  0xee   : > { %v372_v16 = vpop.f32.mrb[0].mxu0  ;;  %v422_v17 = vpop.f32.mrb[0].mxu1 }
  0xef   : > { %v644_v19 = vpop.f32.mrb[1].mxu0  ;;  %v650_v20 = vpop.f32.mrb[1].mxu1 }
  0xf0   : > { %v375_v21 = vpop.f32.mrb[2].mxu0  ;;  %v425_v22 = vpop.f32.mrb[2].mxu1 }
  0xf1   : > { %v430_v24 = vadd.f32 %v425_v22, %v372_v16  ;;  %v645_v26 = vpop.f32.mrb[3].mxu0  ;;  %v651_v27 = vpop.f32.mrb[3].mxu1 }
  0xf3   : > { %v490_v28 = vadd.f32 %v616_v23, %v430_v24 }
  0xf5   : > { %v496_v29 = vadd.f32 %v633_v25, %v490_v28 }
  0xf6   : > { %v474_v30 = vpop.f32.mrb[4].mxu0 }
  0xf7   : > { %v625_v31 = vpack.c.bf16 %v496_v29, %v496_v29  ;;  %v656_v32 = vpop.f32.mrb[5].mxu0 }
  0xf8   : > { %v476_v33 = vpop.f32.mrb[6].mxu0 }
  0xf9   : > { %507 = vst.msk [vmem:[%s299_s23 + $0x4] sm:$0xf] %vm505_vm2, %v625_v31  ;;  %v480_v34 = vadd.f32 %v476_v33, %v422_v17  ;;  %v657_v36 = vpop.f32.mrb[7].mxu0 }
  0xfb   : > { %v489_v37 = vadd.f32 %v616_v23, %v480_v34 }
  0xfd   : > { %v495_v38 = vadd.f32 %v632_v35, %v489_v37 }
  0xff   : > { %v624_v39 = vpack.c.bf16 %v495_v38, %v495_v38 }
 0x101   : > { %506 = vst.msk [vmem:[%s299_s23] sm:$0xf] %vm505_vm2, %v624_v39 }
 0x102 PF: > { %s16_s21 = sadd.s32 1, %s677_s21  }
 0x103   : > { %p13_p4 = scmp.ge.s32.totalorder %s16_s21, 4  }
 0x105   :  { %15 = sbr.rel (!%p13_p4) target bundleno = 1 (0x1), region = 85 }

</bundles_post_ra>
